<compile_context>
chip_gen: v6e
topology: v6e:2x2x1
jax: 0.10.0
libtpu: 0.0.40
codegen_flags: <defaults>
</compile_context>

<pallas_src>
import jax
import jax.numpy as jnp
from jax.experimental import pallas as pl
from jax.experimental.pallas import tpu as pltpu

# ---------------- configuration ----------------
F = 32           # feature_size
H0 = 64          # disc out_size[0]
H1 = 32          # disc out_size[1]
O = 8            # output_size (activity-label space)
OPAD = 128       # lane-padded output width (unmasked stores)
BN_EPS = 1e-5
NEG = -1e30      # padding bias for unused output lanes -> softmax weight 0

GROUP = 8                              # original per-forward batch (BN group)
G_PER_BLOCK = 16                       # 8-row batches stacked per grid step
BLOCK_ROWS = GROUP * G_PER_BLOCK       # 128 rows per MXU push
NUM_BLOCKS = 4
TOTAL_ROWS = BLOCK_ROWS * NUM_BLOCKS   # 512 rows = 64 independent batches


# ---------------- Pallas kernel: one 128-row block per grid step ----------------
def _disc_kernel(x_ref, w0_ref, w1_ref, w2_ref, vec_ref, out_ref, sm_ref):
    x = x_ref[...]                                               # [R, F]

    # fc0 (bias intentionally omitted: cancelled exactly by training-mode BN)
    h0 = jnp.dot(x, w0_ref[...], preferred_element_type=jnp.float32)   # [R, H0]

    # bn0: per original 8-row batch (training mode, biased variance), fused affine
    h0g = h0.reshape(G_PER_BLOCK, GROUP, H0)                     # [G, 8, H0]
    mean = jnp.mean(h0g, axis=1, keepdims=True)                  # [G, 1, H0]
    diff = h0g - mean
    var = jnp.mean(diff * diff, axis=1, keepdims=True)           # [G, 1, H0]
    gamma = vec_ref[0:1, 0:H0]                                   # [1, H0]
    beta = vec_ref[1:2, 0:H0]                                    # [1, H0]
    scale = gamma * jax.lax.rsqrt(var + BN_EPS)                  # [G, 1, H0]
    shift = beta - mean * scale                                  # [G, 1, H0]
    h0 = (h0g * scale + shift).reshape(BLOCK_ROWS, H0)

    # relu0
    h0 = jnp.maximum(h0, 0.0)

    # fc1 + relu1
    b1 = vec_ref[2:3, 0:H1]                                      # [1, H1]
    h1 = jnp.dot(h0, w1_ref[...], preferred_element_type=jnp.float32) + b1
    h1 = jnp.maximum(h1, 0.0)                                    # [R, H1]

    # fc2: weights lane-padded to OPAD; padded bias lanes are -1e30
    logits = jnp.dot(h1, w2_ref[...], preferred_element_type=jnp.float32)
    logits = logits + vec_ref[3:4, :]                            # [R, OPAD]
    out_ref[...] = logits

    # softmax over dim=1 (padded lanes contribute exp(-huge) = 0)
    m = jnp.max(logits, axis=1, keepdims=True)
    e = jnp.exp(logits - m)
    denom = jnp.sum(e, axis=1, keepdims=True)
    sm_ref[...] = e * pl.reciprocal(denom, approx=False)


def discriminator_forward(x, params):
    """x: [TOTAL_ROWS, F] = NUM_BLOCKS*G_PER_BLOCK independent 8-row batches."""
    w0, b0, g0, bt0, w1, b1, w2, b2 = params
    del b0  # cancelled exactly by the batch-mean subtraction of training-mode BN

    # Lane-pad fc2 weights to OPAD columns.
    w2p = jnp.zeros((H1, OPAD), jnp.float32).at[:, :O].set(w2)

    # Pack the small per-feature vectors into one [4, OPAD] input.
    vec = jnp.zeros((4, OPAD), jnp.float32)
    vec = vec.at[0, :H0].set(g0.reshape(-1))      # BN gamma
    vec = vec.at[1, :H0].set(bt0.reshape(-1))     # BN beta
    vec = vec.at[2, :H1].set(b1.reshape(-1))      # fc1 bias
    vec = vec.at[3, :].set(NEG)                   # padded logit lanes -> -inf-ish
    vec = vec.at[3, :O].set(b2.reshape(-1))       # fc2 bias

    logits_p, probs_p = pl.pallas_call(
        _disc_kernel,
        out_shape=(
            jax.ShapeDtypeStruct((TOTAL_ROWS, OPAD), jnp.float32),
            jax.ShapeDtypeStruct((TOTAL_ROWS, OPAD), jnp.float32),
        ),
        grid=(NUM_BLOCKS,),
        in_specs=[
            pl.BlockSpec((BLOCK_ROWS, F), lambda i: (i, 0)),   # x: streamed
            pl.BlockSpec((F, H0), lambda i: (0, 0)),           # weights: resident
            pl.BlockSpec((H0, H1), lambda i: (0, 0)),
            pl.BlockSpec((H1, OPAD), lambda i: (0, 0)),
            pl.BlockSpec((4, OPAD), lambda i: (0, 0)),
        ],
        out_specs=(
            pl.BlockSpec((BLOCK_ROWS, OPAD), lambda i: (i, 0)),
            pl.BlockSpec((BLOCK_ROWS, OPAD), lambda i: (i, 0)),
        ),
        compiler_params=pltpu.CompilerParams(
            dimension_semantics=("parallel",)),
    )(x, w0, w1, w2p, vec)

    return logits_p[:, :O], probs_p[:, :O]


# ---------------- pure-JAX reference (keeps the fc0 bias) ----------------
def _reference(x, params):
    w0, b0, g0, bt0, w1, b1, w2, b2 = params

    def one_batch(xb):                       # xb: [GROUP, F], one module forward
        h0 = xb @ w0 + b0
        mean = jnp.mean(h0, axis=0, keepdims=True)
        var = jnp.mean((h0 - mean) ** 2, axis=0, keepdims=True)
        h0 = (h0 - mean) / jnp.sqrt(var + BN_EPS) * g0 + bt0
        h0 = jnp.maximum(h0, 0.0)
        h1 = jnp.maximum(h0 @ w1 + b1, 0.0)
        out = h1 @ w2 + b2
        return out, jax.nn.softmax(out, axis=1)

    xg = x.reshape(-1, GROUP, F)
    outs, probs = jax.vmap(one_batch)(xg)
    return outs.reshape(-1, O), probs.reshape(-1, O)


def _init_params(key):
    ks = jax.random.split(key, 3)

    def linear_init(kw, fan_in, fan_out):
        # uniform(-1/sqrt(fan_in), 1/sqrt(fan_in)), like torch.nn.Linear
        bound = 1.0 / jnp.sqrt(jnp.float32(fan_in))
        w = jax.random.uniform(kw, (fan_in, fan_out), jnp.float32, -bound, bound)
        b = jax.random.uniform(jax.random.fold_in(kw, 1), (1, fan_out),
                               jnp.float32, -bound, bound)
        return w, b

    w0, b0 = linear_init(ks[0], F, H0)
    w1, b1 = linear_init(ks[1], H0, H1)
    w2, b2 = linear_init(ks[2], H1, O)
    g0 = jnp.ones((1, H0), jnp.float32)      # BatchNorm1d weight (default init)
    bt0 = jnp.zeros((1, H0), jnp.float32)    # BatchNorm1d bias  (default init)
    return (w0, b0, g0, bt0, w1, b1, w2, b2)


if __name__ == "__main__":
    key = jax.random.PRNGKey(0)
    kx, kp = jax.random.split(key)
    x = jax.random.normal(kx, (TOTAL_ROWS, F), jnp.float32)
    params = _init_params(kp)

    logits, probs = discriminator_forward(x, params)
    jax.block_until_ready((logits, probs))

    ref_logits, ref_probs = _reference(x, params)
    assert logits.shape == (TOTAL_ROWS, O) and probs.shape == (TOTAL_ROWS, O)
    assert jnp.allclose(logits, ref_logits, atol=2e-4, rtol=2e-4)
    assert jnp.allclose(probs, ref_probs, atol=1e-4, rtol=1e-3)
    assert jnp.allclose(jnp.sum(probs, axis=1), 1.0, atol=1e-5)

    print("KERNEL_OK")
</pallas_src>

<mosaic_0001>
module attributes {stable_mosaic.version = 11 : i64} {
  func.func @_disc_kernel(%arg0: i32, %arg1: memref<128x32xf32, #tpu.memory_space<vmem>>, %arg2: memref<32x64xf32, #tpu.memory_space<vmem>>, %arg3: memref<64x32xf32, #tpu.memory_space<vmem>>, %arg4: memref<32x128xf32, #tpu.memory_space<vmem>>, %arg5: memref<4x128xf32, #tpu.memory_space<vmem>>, %arg6: memref<128x128xf32, #tpu.memory_space<vmem>>, %arg7: memref<128x128xf32, #tpu.memory_space<vmem>>) attributes {dimension_semantics = [#tpu.dimension_semantics<parallel>], iteration_bounds = array<i64: 4>, scalar_prefetch = 0 : i64, scratch_operands = 0 : i64, tpu.core_type = #tpu.core_type<tc>, window_params = [{transform_indices = @transform_0, window_bounds = array<i64: 128, 32>}, {pipeline_mode = #tpu.pipeline_mode<synchronous>, transform_indices = @transform_1, window_bounds = array<i64: 32, 64>}, {pipeline_mode = #tpu.pipeline_mode<synchronous>, transform_indices = @transform_2, window_bounds = array<i64: 64, 32>}, {pipeline_mode = #tpu.pipeline_mode<synchronous>, transform_indices = @transform_3, window_bounds = array<i64: 32, 128>}, {pipeline_mode = #tpu.pipeline_mode<synchronous>, transform_indices = @transform_4, window_bounds = array<i64: 4, 128>}, {transform_indices = @transform_5, window_bounds = array<i64: 128, 128>}, {transform_indices = @transform_6, window_bounds = array<i64: 128, 128>}]} {
    %c0 = arith.constant 0 : index
    %c0_0 = arith.constant 0 : index
    %0 = vector.load %arg1[%c0, %c0_0] : memref<128x32xf32, #tpu.memory_space<vmem>>, vector<128x32xf32>
    %c0_1 = arith.constant 0 : index
    %c0_2 = arith.constant 0 : index
    %1 = vector.load %arg2[%c0_1, %c0_2] : memref<32x64xf32, #tpu.memory_space<vmem>>, vector<32x64xf32>
    %cst = arith.constant dense<0.000000e+00> : vector<128x64xf32>
    %2 = tpu.matmul %0, %1, %cst {dimension_numbers = #tpu.dot_dimension_numbers<[1], [0], [0], [1], [0, 0, 1, 1], [], []>} : vector<128x32xf32>, vector<32x64xf32>, vector<128x64xf32> -> vector<128x64xf32>
    %3 = vector.shape_cast %2 : vector<128x64xf32> to vector<16x8x64xf32>
    %cst_3 = arith.constant dense<0.000000e+00> : vector<16x64xf32>
    %4 = vector.multi_reduction <add>, %3, %cst_3 [1] : vector<16x8x64xf32> to vector<16x64xf32>
    %5 = vector.shape_cast %4 : vector<16x64xf32> to vector<16x1x64xf32>
    %cst_4 = arith.constant 8.000000e+00 : f32
    %6 = vector.broadcast %cst_4 : f32 to vector<16x1x64xf32>
    %7 = arith.divf %5, %6 : vector<16x1x64xf32>
    %8 = vector.broadcast %7 : vector<16x1x64xf32> to vector<16x8x64xf32>
    %9 = arith.subf %3, %8 : vector<16x8x64xf32>
    %10 = arith.mulf %9, %9 : vector<16x8x64xf32>
    %cst_5 = arith.constant dense<0.000000e+00> : vector<16x64xf32>
    %11 = vector.multi_reduction <add>, %10, %cst_5 [1] : vector<16x8x64xf32> to vector<16x64xf32>
    %12 = vector.shape_cast %11 : vector<16x64xf32> to vector<16x1x64xf32>
    %cst_6 = arith.constant 8.000000e+00 : f32
    %13 = vector.broadcast %cst_6 : f32 to vector<16x1x64xf32>
    %14 = arith.divf %12, %13 : vector<16x1x64xf32>
    %c0_7 = arith.constant 0 : index
    %c0_8 = arith.constant 0 : index
    %15 = vector.load %arg5[%c0_7, %c0_8] : memref<4x128xf32, #tpu.memory_space<vmem>>, vector<1x64xf32>
    %c1 = arith.constant 1 : index
    %c0_9 = arith.constant 0 : index
    %16 = vector.load %arg5[%c1, %c0_9] : memref<4x128xf32, #tpu.memory_space<vmem>>, vector<1x64xf32>
    %cst_10 = arith.constant 9.99999974E-6 : f32
    %17 = vector.broadcast %cst_10 : f32 to vector<16x1x64xf32>
    %18 = arith.addf %14, %17 : vector<16x1x64xf32>
    %19 = math.rsqrt %18 : vector<16x1x64xf32>
    %20 = vector.shape_cast %15 : vector<1x64xf32> to vector<1x1x64xf32>
    %21 = vector.broadcast %20 : vector<1x1x64xf32> to vector<16x1x64xf32>
    %22 = arith.mulf %21, %19 : vector<16x1x64xf32>
    %23 = arith.mulf %7, %22 : vector<16x1x64xf32>
    %24 = vector.shape_cast %16 : vector<1x64xf32> to vector<1x1x64xf32>
    %25 = vector.broadcast %24 : vector<1x1x64xf32> to vector<16x1x64xf32>
    %26 = arith.subf %25, %23 : vector<16x1x64xf32>
    %27 = vector.broadcast %22 : vector<16x1x64xf32> to vector<16x8x64xf32>
    %28 = arith.mulf %3, %27 : vector<16x8x64xf32>
    %29 = vector.broadcast %26 : vector<16x1x64xf32> to vector<16x8x64xf32>
    %30 = arith.addf %28, %29 : vector<16x8x64xf32>
    %31 = vector.shape_cast %30 : vector<16x8x64xf32> to vector<128x64xf32>
    %cst_11 = arith.constant 0.000000e+00 : f32
    %32 = vector.broadcast %cst_11 : f32 to vector<128x64xf32>
    %33 = arith.maximumf %31, %32 : vector<128x64xf32>
    %c2 = arith.constant 2 : index
    %c0_12 = arith.constant 0 : index
    %34 = vector.load %arg5[%c2, %c0_12] : memref<4x128xf32, #tpu.memory_space<vmem>>, vector<1x32xf32>
    %c0_13 = arith.constant 0 : index
    %c0_14 = arith.constant 0 : index
    %35 = vector.load %arg3[%c0_13, %c0_14] : memref<64x32xf32, #tpu.memory_space<vmem>>, vector<64x32xf32>
    %cst_15 = arith.constant dense<0.000000e+00> : vector<128x32xf32>
    %36 = tpu.matmul %33, %35, %cst_15 {dimension_numbers = #tpu.dot_dimension_numbers<[1], [0], [0], [1], [0, 0, 1, 1], [], []>} : vector<128x64xf32>, vector<64x32xf32>, vector<128x32xf32> -> vector<128x32xf32>
    %37 = vector.broadcast %34 : vector<1x32xf32> to vector<128x32xf32>
    %38 = arith.addf %36, %37 : vector<128x32xf32>
    %cst_16 = arith.constant 0.000000e+00 : f32
    %39 = vector.broadcast %cst_16 : f32 to vector<128x32xf32>
    %40 = arith.maximumf %38, %39 : vector<128x32xf32>
    %c0_17 = arith.constant 0 : index
    %c0_18 = arith.constant 0 : index
    %41 = vector.load %arg4[%c0_17, %c0_18] : memref<32x128xf32, #tpu.memory_space<vmem>>, vector<32x128xf32>
    %cst_19 = arith.constant dense<0.000000e+00> : vector<128x128xf32>
    %42 = tpu.matmul %40, %41, %cst_19 {dimension_numbers = #tpu.dot_dimension_numbers<[1], [0], [0], [1], [0, 0, 1, 1], [], []>} : vector<128x32xf32>, vector<32x128xf32>, vector<128x128xf32> -> vector<128x128xf32>
    %c3 = arith.constant 3 : index
    %c0_20 = arith.constant 0 : index
    %43 = vector.load %arg5[%c3, %c0_20] : memref<4x128xf32, #tpu.memory_space<vmem>>, vector<1x128xf32>
    %44 = vector.broadcast %43 : vector<1x128xf32> to vector<128x128xf32>
    %45 = arith.addf %42, %44 : vector<128x128xf32>
    %c0_21 = arith.constant 0 : index
    %c0_22 = arith.constant 0 : index
    %46 = vector.load %arg6[%c0_21, %c0_22] : memref<128x128xf32, #tpu.memory_space<vmem>>, vector<128x128xf32>
    tpu.vector_store %arg6[%c0_21, %c0_22], %45 {strides = array<i32>} : memref<128x128xf32, #tpu.memory_space<vmem>>, vector<128x128xf32>,
    %cst_23 = arith.constant dense<0xFF800000> : vector<128xf32>
    %47 = vector.multi_reduction <maximumf>, %45, %cst_23 [1] : vector<128x128xf32> to vector<128xf32>
    %48 = vector.shape_cast %47 : vector<128xf32> to vector<128x1xf32>
    %49 = vector.broadcast %48 : vector<128x1xf32> to vector<128x128xf32>
    %50 = arith.subf %45, %49 : vector<128x128xf32>
    %51 = math.exp %50 : vector<128x128xf32>
    %cst_24 = arith.constant dense<0.000000e+00> : vector<128xf32>
    %52 = vector.multi_reduction <add>, %51, %cst_24 [1] : vector<128x128xf32> to vector<128xf32>
    %53 = vector.shape_cast %52 : vector<128xf32> to vector<128x1xf32>
    %54 = tpu.reciprocal %53 : vector<128x1xf32> -> vector<128x1xf32>
    %55 = vector.broadcast %54 : vector<128x1xf32> to vector<128x128xf32>
    %56 = arith.mulf %51, %55 : vector<128x128xf32>
    %c0_25 = arith.constant 0 : index
    %c0_26 = arith.constant 0 : index
    %57 = vector.load %arg7[%c0_25, %c0_26] : memref<128x128xf32, #tpu.memory_space<vmem>>, vector<128x128xf32>
    tpu.vector_store %arg7[%c0_25, %c0_26], %56 {strides = array<i32>} : memref<128x128xf32, #tpu.memory_space<vmem>>, vector<128x128xf32>,
    return
  }
  func.func @transform_0(%arg0: i32) -> (i32, i32) {
    %c0_i32 = arith.constant 0 : i32
    %c0_i32_0 = arith.constant 0 : i32
    return %arg0, %c0_i32 : i32, i32
  }
  func.func @transform_1(%arg0: i32) -> (i32, i32) {
    %c0_i32 = arith.constant 0 : i32
    %c0_i32_0 = arith.constant 0 : i32
    %c0_i32_1 = arith.constant 0 : i32
    return %c0_i32, %c0_i32_0 : i32, i32
  }
  func.func @transform_2(%arg0: i32) -> (i32, i32) {
    %c0_i32 = arith.constant 0 : i32
    %c0_i32_0 = arith.constant 0 : i32
    %c0_i32_1 = arith.constant 0 : i32
    return %c0_i32, %c0_i32_0 : i32, i32
  }
  func.func @transform_3(%arg0: i32) -> (i32, i32) {
    %c0_i32 = arith.constant 0 : i32
    %c0_i32_0 = arith.constant 0 : i32
    %c0_i32_1 = arith.constant 0 : i32
    return %c0_i32, %c0_i32_0 : i32, i32
  }
  func.func @transform_4(%arg0: i32) -> (i32, i32) {
    %c0_i32 = arith.constant 0 : i32
    %c0_i32_0 = arith.constant 0 : i32
    %c0_i32_1 = arith.constant 0 : i32
    return %c0_i32, %c0_i32_0 : i32, i32
  }
  func.func @transform_5(%arg0: i32) -> (i32, i32) {
    %c0_i32 = arith.constant 0 : i32
    %c0_i32_0 = arith.constant 0 : i32
    return %arg0, %c0_i32 : i32, i32
  }
  func.func @transform_6(%arg0: i32) -> (i32, i32) {
    %c0_i32 = arith.constant 0 : i32
    %c0_i32_0 = arith.constant 0 : i32
    return %arg0, %c0_i32 : i32, i32
  }
}

</mosaic_0001>

<bundles_post_ra>
// kernel: tpu_custom_call.1
= control target key start
LH: loop header
LB: loop body
LE: loop exit
PB: predicated region body
PF: predicated region fallthrough
CT: control target
= control target key end

     0   :  { %12 = vsyncpa [#allocation3], 0  ;;  %s2989_s0 = inlined_call_operand.vmem [shape: f32[512,32], index: 0, kind: input, shape index: {}]   ;;  %s2990_s1 = inlined_call_operand.vmem [shape: f32[32,64], index: 1, kind: input, shape index: {}]   ;;  %s2991_s2 = inlined_call_operand.vmem [shape: f32[64,32], index: 2, kind: input, shape index: {}]   ;;  %s2992_s3 = inlined_call_operand.vmem [shape: f32[32,128], index: 3, kind: input, shape index: {}]   ;;  %s2993_s4 = inlined_call_operand.vmem [shape: f32[4,128], index: 4, kind: input, shape index: {}]   ;;  %s2994_s5 = inlined_call_operand.hbm [shape: f32[512,128], index: 5, kind: output, shape index: {0}]   ;;  %s2995_s6 = inlined_call_operand.hbm [shape: f32[512,128], index: 6, kind: output, shape index: {1}]  }
   0x1   :  { %14 = vsyncpa [#allocation3 + $0x1], 0 }
   0x2   :  { %15 = vsyncpa [#allocation5], 0 }
   0x3   :  { %17 = vsyncpa [#allocation5 + $0x1], 0  ;;  %s2273_s21 = smov 0   ;;  %s2275_s22 = smov 0  }
   0x4   :  { %s2277_s23 = smov 0   ;;  %s2279_s24 = smov 0  }
   0x5 LB: > { %s2294_s25 = sadd.s32 4294967295, %s2232_s24   ;;  %s1756_s26 = sadd.s32 4294967294, %s2232_s24   ;;  %s2232_s24 = sphi %s2279_s24, %s3001_s24   ;;  %s2228_s23 = sphi %s2277_s23, %s3000_s23   ;;  %s2224_s22 = sphi %s2275_s22, %s2999_s22   ;;  %s2220_s21 = sphi %s2273_s21, %s2998_s21  }
   0x6   : > { %s2298_s27 = sadd.s32 1, %s2232_s24   ;;  %s140_s28 = sadd.s32 1, %s2228_s23 }
   0x7   : > { %s137_s29 = ssub.s32 %s2232_s24, %s2298_s27  ;;  %p150_p0 = scmp.ne.s32.totalorder %s2228_s23, %s2224_s22 }
   0x8   : > { %p138_p1 = scmp.eq.s32.totalorder %s137_s29, 0  ;;  %p151_p2 = scmp.eq.s32.totalorder %s2294_s25, 3 }
   0x9   : > { %p156_p3 = scmp.ne.s32.totalorder %s2224_s22, %s2220_s21  ;;  %p157_p4 = scmp.eq.s32.totalorder %s1756_s26, 3 }
   0xa   : > { %s2309_s30 = scalar_select %p138_p1, %s2228_s23, %s140_s28  }
   0xb   : > { %p2311_p5 = por %p151_p2, %p150_p0  ;;  %p2315_p6 = por %p157_p4, %p156_p3 }
   0xc   : > { %p1759_p7 = scmp.ge.s32.totalorder %s2232_s24, 1  ;;  %p222_p8 = scmp.lt.s32.totalorder %s2232_s24, 5 }
   0xe   : > { %p223_p9 = pnand %p1759_p7, %p222_p8 }
   0xf   : > { %s1762_s13 = sshll.u32 (!%p223_p9), %s2294_s25, 4  ;;  %s2711_s28 = sand.u32 (!%p223_p9), 1, %s2224_s22  }
  0x10   : > { %226 = sbr.rel (%p223_p9) target bundleno = 1090 (0x442), region = 40  ;;  %p258_p10 = scmp.lt.s32.totalorder (!%p223_p9), %s1762_s13, 63 }
  0x11   : > { %s1760_s29 = sshll.u32 (!%p223_p9), %s2711_s28, 7  ;;  %s1822_s12 = sshll.u32 (!%p223_p9), %s2294_s25, 11 }
  0x12   : > { %s2721_s11 = scalar_lea.vmem (!%p223_p9), [#allocation2], %s1760_s29  ;;  %s2872_s16 = scalar_lea.hbm (!%p223_p9), %s2994_s5, %s1822_s12 }
  0x13   : > { %s1628_s17 = scalar_lea.sflag (!%p223_p9), [#allocation3], %s2711_s28  ;;  %s2234_s19 = smov (!%p223_p9), [#allocation2]  }
  0x14   : > { %s2146_s20 = sshll.u32 (!%p223_p9), %s2234_s19, 4  ;;  %s2147_s20 = int_to_ptr.vmem [resolvable:$false] %s2146_s20 }
  0x15   : > { %v284_v0 = vld [vmem:[%s2990_s1 + $0x18] sm:$0xff]  ;;  %v283_v1 = vld [vmem:[%s2990_s1 + $0x10] sm:$0xff]  ;;  %v282_v2 = vld [vmem:[%s2990_s1 + $0x8] sm:$0xff]  ;;  %s3003_s13 = smov (!%p258_p10, %s1762_s13), 63  ;;  %vm285_vm0 = vcmask 261120   ;;  %vm479_vm1 = vcmask 523264  }
  0x16   : > { %1888 = vmatprep.subr.mxu0 %v284_v0  ;;  %1992 = vmatprep.subr.mxu1 %v284_v0  ;;  %v281_v3 = vld [vmem:[%s2990_s1] sm:$0xff]  ;;  %s1763_s18 = sshll.u32 %s3003_s13, 3  ;;  %v1035_v20 = vld [vmem:[%s2991_s2 + $0x38] sm:$0xff]  ;;  %v1034_v21 = vld [vmem:[%s2991_s2 + $0x30] sm:$0xff]  ;;  %s1646_s13 = sshll.u32 %s2721_s11, 4  ;;  %s2874_s13 = int_to_ptr.vmem [resolvable:$true] %s1646_s13 }
  0x17   : > { %1889 = vmatpush3.msra.mxu0 %v284_v0  ;;  %1996 = vmatpush3.msra.mxu1 %v284_v0  ;;  %s2337_s26 = scalar_lea.vmem %s2989_s0, %s1763_s18  ;;  %v1033_v22 = vld [vmem:[%s2991_s2 + $0x28] sm:$0xff]  ;;  %v1032_v23 = vld [vmem:[%s2991_s2 + $0x20] sm:$0xff]  ;;  %v1031_v24 = vld [vmem:[%s2991_s2 + $0x18] sm:$0xff]  ;;  %s2142_s18 = scalar_lea.vmem %s2874_s13, 2048 }
  0x18   : > { %1890 = vmatprep.subr.mxu0 %v283_v1  ;;  %1993 = vmatprep.subr.mxu1 %v283_v1  ;;  %v265_v4 = vld [vmem:[%s2337_s26] sm:$0xff]  ;;  %v266_v6 = vld [vmem:[%s2337_s26 + $0x8] sm:$0xff]  ;;  %v267_v8 = vld [vmem:[%s2337_s26 + $0x10] sm:$0xff]  ;;  %p2143_p11 = scmp.ne.s32.totalorder %s2874_s13, %s2142_s18  ;;  %p2149_p0 = scmp.lt.s32.totalorder %s2874_s13, %s2147_s20 }
  0x19   : > { %1891 = vmatpush3.msra.mxu0 %v283_v1  ;;  %1997 = vmatpush3.msra.mxu1 %v283_v1  ;;  %v273_v5 = vld [vmem:[%s2337_s26 + $0x40] sm:$0xff]  ;;  %v274_v7 = vld [vmem:[%s2337_s26 + $0x48] sm:$0xff]  ;;  %v275_v9 = vld [vmem:[%s2337_s26 + $0x50] sm:$0xff] }
  0x1a   : > { %1892 = vmatprep.subr.mxu0 %v282_v2  ;;  %1994 = vmatprep.subr.mxu1 %v282_v2  ;;  %v268_v10 = vld [vmem:[%s2337_s26 + $0x18] sm:$0xff]  ;;  %v269_v12 = vld [vmem:[%s2337_s26 + $0x20] sm:$0xff]  ;;  %v270_v14 = vld [vmem:[%s2337_s26 + $0x28] sm:$0xff]  ;;  %p2144_p12 = pnand %p2143_p11, %p2311_p5 }
  0x1b   : > { %1893 = vmatpush3.msra.mxu0 %v282_v2  ;;  %1998 = vmatpush3.msra.mxu1 %v282_v2  ;;  %v276_v11 = vld [vmem:[%s2337_s26 + $0x58] sm:$0xff]  ;;  %v277_v13 = vld [vmem:[%s2337_s26 + $0x60] sm:$0xff]  ;;  %v278_v15 = vld [vmem:[%s2337_s26 + $0x68] sm:$0xff] }
  0x1c   : > { %1894 = vmatprep.subr.mxu0 %v281_v3  ;;  %1995 = vmatprep.subr.mxu1 %v281_v3  ;;  %v271_v16 = vld [vmem:[%s2337_s26 + $0x30] sm:$0xff]  ;;  %v272_v18 = vld [vmem:[%s2337_s26 + $0x38] sm:$0xff]  ;;  %v1029_v26 = vld [vmem:[%s2991_s2 + $0x8] sm:$0xff]  ;;  %p2145_p13 = pneg %p2144_p12 }
  0x1d   : > { %1895 = vmatpush3.msra.mxu0 %v281_v3  ;;  %1999 = vmatpush3.msra.mxu1 %v281_v3  ;;  %v279_v17 = vld [vmem:[%s2337_s26 + $0x70] sm:$0xff]  ;;  %v280_v19 = vld [vmem:[%s2337_s26 + $0x78] sm:$0xff]  ;;  %v1028_v27 = vld [vmem:[%s2991_s2] sm:$0xff]  ;;  %s2148_s26 = scalar_lea.vmem %s2147_s20, 4096 }
  0x1e   : > { %1896 = vmatprep.mubr.msk.f32.mxu0 %vm285_vm0, %v265_v4  ;;  %1908 = vmatprep.mubr.msk.f32.mxu1 %vm285_vm0, %v273_v5  ;;  %v1030_v25 = vld [vmem:[%s2991_s2 + $0x10] sm:$0xff]  ;;  %p2150_p1 = scmp.lt.s32.totalorder %s2148_s26, %s2142_s18 }
  0x1f   : > { %1897 = vmatmul.mubr.msk.f32.vlgmr.msra.gmra.mxu0 %vm285_vm0, %v266_v6  ;;  %1909 = vmatmul.mubr.msk.f32.vlgmr.msra.gmra.mxu1 %vm285_vm0, %v274_v7 }
  0x20   : > { %1899 = vmatprep.mubr.msk.f32.mxu0 %vm285_vm0, %v267_v8  ;;  %1911 = vmatprep.mubr.msk.f32.mxu1 %vm285_vm0, %v275_v9  ;;  %p2151_p2 = por %p2150_p1, %p2149_p0 }
  0x21   : > { %1920 = vmatprep.subr.mxu1 %v1035_v20 }
  0x22   : > { %1921 = vmatpush3.msra.mxu1 %v1035_v20  ;;  %p2152_p3 = pnand %p2151_p2, %p2145_p13 }
  0x23   : > { %1900 = vmatmul.mubr.msk.f32.gmra.mxu0 %vm285_vm0, %v268_v10  ;;  %1912 = vmatmul.mubr.msk.f32.gmra.mxu1 %vm285_vm0, %v276_v11 }
  0x24   : > { %1902 = vmatprep.mubr.msk.f32.mxu0 %vm285_vm0, %v269_v12  ;;  %1914 = vmatprep.mubr.msk.f32.mxu1 %vm285_vm0, %v277_v13 }
  0x25   : > { %1922 = vmatprep.subr.mxu1 %v1034_v21 }
  0x26   : > { %1923 = vmatpush3.msra.mxu1 %v1034_v21 }
  0x27   : > { %1903 = vmatmul.mubr.msk.f32.gmra.mxu0 %vm285_vm0, %v270_v14  ;;  %1915 = vmatmul.mubr.msk.f32.gmra.mxu1 %vm285_vm0, %v278_v15 }
  0x28   : > { %1905 = vmatprep.mubr.msk.f32.mxu0 %vm285_vm0, %v271_v16  ;;  %1917 = vmatprep.mubr.msk.f32.mxu1 %vm285_vm0, %v279_v17 }
  0x29   : > { %1924 = vmatprep.subr.mxu1 %v1033_v22 }
  0x2a   : > { %1925 = vmatpush3.msra.mxu1 %v1033_v22 }
  0x2b   : > { %1906 = vmatmul.mubr.msk.f32.gmra.mxu0 %vm285_vm0, %v272_v18  ;;  %1918 = vmatmul.mubr.msk.f32.gmra.mxu1 %vm285_vm0, %v280_v19 }
  0x2c   : > { %1926 = vmatprep.subr.mxu1 %v1032_v23 }
  0x2d   : > { %1927 = vmatpush3.msra.mxu1 %v1032_v23 }
  0x2e   : > { %1928 = vmatprep.subr.mxu1 %v1031_v24 }
  0x2f   : > { %1929 = vmatpush3.msra.mxu1 %v1031_v24 }
  0x30   : > { %1930 = vmatprep.subr.mxu1 %v1030_v25 }
  0x31   : > { %1931 = vmatpush3.msra.mxu1 %v1030_v25 }
  0x32   : > { %1932 = vmatprep.subr.mxu1 %v1029_v26 }
  0x33   : > { %1933 = vmatpush3.msra.mxu1 %v1029_v26 }
  0x34   : > { %1934 = vmatprep.subr.mxu1 %v1028_v27 }
  0x35   : > { %1935 = vmatpush3.msra.mxu1 %v1028_v27 }
  0xdf   : > { %v2395_v28 = vpop.f32.mrf.mxu0  ;;  %v2397_v29 = vpop.f32.mrf.mxu1 }
  0xe0   : > { %v487_v30 = vsel %vm479_vm1, %v2395_v28, 0.0  ;;  %v543_v32 = vsel %vm479_vm1, %v2397_v29, 0.0 }
  0xe1   : > { %v488_v31 = vrot.slane %v487_v30, 4  ;;  %v2403_v33 = vpop.f32.mrf.mxu0  ;;  %v544_v38 = vrot.slane %v543_v32, 4  ;;  %v2411_v42 = vpop.f32.mrf.mxu1 }
  0xe2   : > { %v480_v34 = vsel %vm479_vm1, %v2403_v33, 0.0  ;;  %v536_v49 = vsel %vm479_vm1, %v2411_v42, 0.0 }
  0xe3   : > { %v489_v35 = vadd.f32 %v488_v31, %v487_v30  ;;  %v481_v36 = vrot.slane %v480_v34, 4  ;;  %v2407_v37 = vpop.f32.mrf.mxu0  ;;  %v545_v48 = vadd.f32 %v544_v38, %v543_v32  ;;  %v537_v58 = vrot.slane %v536_v49, 4  ;;  %v2419_v59 = vpop.f32.mrf.mxu1 }
  0xe4   : > { %v501_v39 = vsel %vm479_vm1, %v2407_v37, 0.0  ;;  %v557_v2 = vsel %vm479_vm1, %v2419_v59, 0.0 }
  0xe5   : > { %v490_v40 = vrot.slane %v489_v35, 2  ;;  %v482_v41 = vadd.f32 %v481_v36, %v480_v34  ;;  %v2413_v43 = vpop.f32.mrf.mxu0  ;;  %v502_v44 = vrot.slane %v501_v39, 4  ;;  %v546_v60 = vrot.slane %v545_v48, 2  ;;  %v2429_v10 = vpop.f32.mrf.mxu1  ;;  %v1251_v36 = vld [vmem:[%s2992_s3 + $0x10] sm:$0xff] }
  0xe6   : > { %v494_v45 = vsel %vm479_vm1, %v2413_v43, 0.0  ;;  %v538_v6 = vadd.f32 %v537_v58, %v536_v49  ;;  %v558_v13 = vrot.slane %v557_v2, 4  ;;  %v550_v19 = vsel %vm479_vm1, %v2429_v10, 0.0 }
  0xe7   : > { %v491_v46 = vadd.f32 %v490_v40, %v489_v35  ;;  %v483_v47 = vrot.slane %v482_v41, 2  ;;  %v503_v50 = vadd.f32 %v502_v44, %v501_v39  ;;  %v495_v51 = vrot.slane %v494_v45, 4  ;;  %v1252_v35 = vld [vmem:[%s2992_s3 + $0x18] sm:$0xff] }
  0xe8   : > { %v547_v7 = vadd.f32 %v546_v60, %v545_v48  ;;  %v539_v18 = vrot.slane %v538_v6, 2  ;;  %v559_v24 = vadd.f32 %v558_v13, %v557_v2  ;;  %v551_v30 = vrot.slane %v550_v19, 4  ;;  %1960 = vmatprep.subr.mxu0 %v1252_v35 }
  0xe9   : > { %v492_v52 = vrot.slane %v491_v46, 1  ;;  %v484_v53 = vadd.f32 %v483_v47, %v482_v41  ;;  %v504_v54 = vrot.slane %v503_v50, 2  ;;  %v496_v55 = vadd.f32 %v495_v51, %v494_v45  ;;  %1961 = vmatpush3.msra.mxu0 %v1252_v35 }
  0xea   : > { %v548_v21 = vrot.slane %v547_v7, 1  ;;  %v540_v31 = vadd.f32 %v539_v18, %v538_v6  ;;  %v560_v44 = vrot.slane %v559_v24, 2  ;;  %v552_v49 = vadd.f32 %v551_v30, %v550_v19  ;;  %1962 = vmatprep.subr.mxu0 %v1251_v36  ;;  %v2464_v19 = vpop.f32.mrf.mxu1 }
  0xeb   : > { %v493_v56 = vadd.f32 %v492_v52, %v491_v46  ;;  %v485_v57 = vrot.slane %v484_v53, 1  ;;  %v505_v61 = vadd.f32 %v504_v54, %v503_v50  ;;  %v497_v62 = vrot.slane %v496_v55, 2  ;;  %v1250_v46 = vld [vmem:[%s2992_s3 + $0x8] sm:$0xff]  ;;  %1963 = vmatpush3.msra.mxu0 %v1251_v36 }
  0xec   : > { %v549_v39 = vadd.f32 %v548_v21, %v547_v7  ;;  %v541_v50 = vrot.slane %v540_v31, 1  ;;  %1964 = vmatprep.subr.mxu0 %v1250_v46 }
  0xed   : > { %v2421_v63 = vmul.f32 0.125, %v493_v56  ;;  %v486_v0 = vadd.f32 %v485_v57, %v484_v53  ;;  %v506_v1 = vrot.slane %v505_v61, 1  ;;  %v498_v3 = vadd.f32 %v497_v62, %v496_v55  ;;  %1965 = vmatpush3.msra.mxu0 %v1250_v46 }
  0xee   : > { %v2456_v54 = vmul.f32 0.125, %v549_v39  ;;  %v561_v57 = vadd.f32 %v560_v44, %v559_v24  ;;  %v553_v62 = vrot.slane %v552_v49, 2 }
  0xef   : > { %v610_v4 = vsub.f32 %v2395_v28, %v2421_v63  ;;  %v2427_v5 = vmul.f32 0.125, %v486_v0  ;;  %v507_v8 = vadd.f32 %v506_v1, %v505_v61  ;;  %v499_v9 = vrot.slane %v498_v3, 1 }
  0xf0   : > { %v542_v0 = vadd.f32 %v541_v50, %v540_v31  ;;  %v571_v31 = vsel %vm479_vm1, %v2464_v19, 0.0 }
  0xf1   : > { %v626_v11 = vmul.f32 %v610_v4, %v610_v4  ;;  %v609_v12 = vsub.f32 %v2403_v33, %v2427_v5  ;;  %v2433_v14 = vmul.f32 0.125, %v507_v8  ;;  %v500_v15 = vadd.f32 %v499_v9, %v498_v3 }
  0xf2   : > { %v618_v4 = vsub.f32 %v2397_v29, %v2456_v54  ;;  %v562_v8 = vrot.slane %v561_v57, 1 }
  0xf3   : > { %v648_v16 = vsel %vm479_vm1, %v626_v11, 0.0  ;;  %v625_v17 = vmul.f32 %v609_v12, %v609_v12  ;;  %v612_v22 = vsub.f32 %v2407_v37, %v2433_v14  ;;  %v2441_v25 = vmul.f32 0.125, %v500_v15  ;;  %v2460_v11 = vpop.f32.mrf.mxu0 }
  0xf4   : > { %v649_v20 = vrot.slane %v648_v16, 4  ;;  %v554_v15 = vadd.f32 %v553_v62, %v552_v49  ;;  %v563_v24 = vadd.f32 %v562_v8, %v561_v57 }
  0xf5   : > { %v641_v23 = vsel %vm479_vm1, %v625_v17, 0.0  ;;  %v628_v32 = vmul.f32 %v612_v22, %v612_v22  ;;  %v611_v34 = vsub.f32 %v2413_v43, %v2441_v25  ;;  %v515_v22 = vsel %vm479_vm1, %v2460_v11, 0.0 }
  0xf6   : > { %v650_v26 = vadd.f32 %v649_v20, %v648_v16  ;;  %v642_v27 = vrot.slane %v641_v23, 4  ;;  %v2462_v16 = vmul.f32 0.125, %v542_v0  ;;  %v634_v20 = vmul.f32 %v618_v4, %v618_v4  ;;  %v2486_v0 = vld [vmem:[%s2993_s4] sm:$0x1] }
  0xf7   : > { %v662_v41 = vsel %vm479_vm1, %v628_v32, 0.0  ;;  %v627_v45 = vmul.f32 %v611_v34, %v611_v34  ;;  %v516_v30 = vrot.slane %v515_v22, 4  ;;  %v2470_v32 = vpop.f32.mrf.mxu0 }
  0xf8   : > { %v651_v38 = vrot.slane %v650_v26, 2  ;;  %v643_v40 = vadd.f32 %v642_v27, %v641_v23  ;;  %v663_v51 = vrot.slane %v662_v41, 4  ;;  %v555_v27 = vrot.slane %v554_v15, 1 }
  0xf9   : > { %v655_v52 = vsel %vm479_vm1, %v627_v45, 0.0  ;;  %v617_v34 = vsub.f32 %v2411_v42, %v2462_v16  ;;  %v517_v39 = vadd.f32 %v516_v30, %v515_v22  ;;  %v508_v46 = vsel %vm479_vm1, %v2470_v32, 0.0 }
  0xfa   : > { %v652_v47 = vadd.f32 %v651_v38, %v650_v26  ;;  %v644_v48 = vrot.slane %v643_v40, 2  ;;  %v664_v56 = vadd.f32 %v663_v51, %v662_v41  ;;  %v656_v58 = vrot.slane %v655_v52, 4 }
  0xfb   : > { %v704_v38 = vsel %vm479_vm1, %v634_v20, 0.0  ;;  %v851_v41 = vlaneseq  ;;  %v518_v49 = vrot.slane %v517_v39, 2  ;;  %v509_v57 = vrot.slane %v508_v46, 4 }
  0xfc   : > { %v653_v53 = vrot.slane %v652_v47, 1  ;;  %v645_v55 = vadd.f32 %v644_v48, %v643_v40  ;;  %v665_v1 = vrot.slane %v664_v56, 2  ;;  %v657_v2 = vadd.f32 %v656_v58, %v655_v52 }
  0xfd   : > { %v572_v40 = vrot.slane %v571_v31, 4  ;;  %v556_v48 = vadd.f32 %v555_v27, %v554_v15  ;;  %v705_v51 = vrot.slane %v704_v38, 4  ;;  %v633_v52 = vmul.f32 %v617_v34, %v617_v34  ;;  %v2509_v34 = vpop.f32.mrf.mxu0 }
  0xfe   : > { %v654_v60 = vadd.f32 %v653_v53, %v652_v47  ;;  %v646_v61 = vrot.slane %v645_v55, 1  ;;  %v666_v7 = vadd.f32 %v665_v1, %v664_v56  ;;  %v658_v9 = vrot.slane %v657_v2, 2 }
  0xff   : > { %v2477_v47 = vmul.f32 0.125, %v563_v24  ;;  %v573_v50 = vadd.f32 %v572_v40, %v571_v31  ;;  %v519_v56 = vadd.f32 %v518_v49, %v517_v39  ;;  %v852_v58 = vshrl.u32 %v851_v41, 7 }
 0x100   : > { %v754_v3 = vmul.f32 0.125, %v654_v60  ;;  %v647_v6 = vadd.f32 %v646_v61, %v645_v55  ;;  %v667_v17 = vrot.slane %v666_v7, 1  ;;  %v659_v18 = vadd.f32 %v658_v9, %v657_v2  ;;  %v2479_v55 = vpop.f32.mrf.mxu1 }
 0x101   : > { %v574_v60 = vrot.slane %v573_v50, 2  ;;  %v520_v61 = vrot.slane %v519_v56, 1  ;;  %v564_v62 = vsel %vm479_vm1, %v2479_v55, 0.0  ;;  %v706_v1 = vadd.f32 %v705_v51, %v704_v38 }
 0x102   : > { %v772_v12 = vadd.f32 1e-05, %v754_v3  ;;  %v753_v13 = vmul.f32 0.125, %v647_v6  ;;  %v668_v23 = vadd.f32 %v667_v17, %v666_v7  ;;  %v660_v26 = vrot.slane %v659_v18, 1 }
 0x103   : > { %v697_v2 = vsel %vm479_vm1, %v633_v52, 0.0  ;;  %v620_v3 = vsub.f32 %v2419_v59, %v2477_v47  ;;  %v2491_v4 = vmul.f32 0.125, %v556_v48  ;;  %v521_v6 = vadd.f32 %v520_v61, %v519_v56  ;;  %v2522_v56 = vpop.f32.mrf.mxu1 }
 0x104   : > { %2046 = vrsqrt.f32 %v772_v12  ;;  %v771_v21 = vadd.f32 1e-05, %v753_v13  ;;  %v756_v35 = vmul.f32 0.125, %v668_v23  ;;  %v661_v36 = vadd.f32 %v660_v26, %v659_v18 }
 0x105   : > { %v510_v7 = vadd.f32 %v509_v57, %v508_v46  ;;  %v2493_v9 = vsub.s32 0, %v852_v58  ;;  %v575_v12 = vadd.f32 %v574_v60, %v573_v50  ;;  %v565_v13 = vrot.slane %v564_v62, 4 }
 0x106   : > { %2048 = vrsqrt.f32 %v771_v21  ;;  %v774_v44 = vadd.f32 1e-05, %v756_v35  ;;  %v755_v45 = vmul.f32 0.125, %v661_v36  ;;  %v698_v17 = vrot.slane %v697_v2, 4  ;;  %v2501_v21 = vld [vmem:[%s2993_s4 + $0x1] sm:$0x1] }
 0x107   : > { %v2496_v18 = vmul.f32 0.125, %v521_v6  ;;  %v707_v22 = vrot.slane %v706_v1, 2  ;;  %v636_v23 = vmul.f32 %v620_v3, %v620_v3  ;;  %v619_v24 = vsub.f32 %v2429_v10, %v2491_v4 }
 0x108   : > { %2050 = vrsqrt.f32 %v774_v44  ;;  %v773_v53 = vadd.f32 1e-05, %v755_v45  ;;  %v511_v31 = vrot.slane %v510_v7, 2  ;;  %v576_v36 = vrot.slane %v575_v12, 1 }
 0x109   : > { %v614_v30 = vsub.f32 %v2460_v11, %v2496_v18  ;;  %v566_v38 = vadd.f32 %v565_v13, %v564_v62  ;;  %v699_v44 = vadd.f32 %v698_v17, %v697_v2  ;;  %v718_v45 = vsel %vm479_vm1, %v636_v23, 0.0 }
 0x10a   : > { %2052 = vrsqrt.f32 %v773_v53  ;;  %v635_v46 = vmul.f32 %v619_v24, %v619_v24  ;;  %v529_v48 = vsel %vm479_vm1, %v2509_v34, 0.0  ;;  %v512_v53 = vadd.f32 %v511_v31, %v510_v7  ;;  %v2537_v24 = vpop.f32.mrf.mxu0 }
 0x10b   : > { %v630_v52 = vmul.f32 %v614_v30, %v614_v30  ;;  %v577_v58 = vadd.f32 %v576_v36, %v575_v12  ;;  %v567_v60 = vrot.slane %v566_v38, 2  ;;  %v530_v2 = vrot.slane %v529_v48, 4 }
 0x10c   : > { %v719_v13 = vrot.slane %v718_v45, 4  ;;  %v585_v7 = vsel %vm479_vm1, %v2522_v56, 0.0  ;;  %v513_v17 = vrot.slane %v512_v53, 1 }
 0x10d   : > { %v676_v12 = vsel %vm479_vm1, %v630_v52, 0.0  ;;  %v568_v23 = vadd.f32 %v567_v60, %v566_v38  ;;  %v586_v30 = vrot.slane %v585_v7, 4  ;;  %v522_v38 = vsel %vm479_vm1, %v2537_v24, 0.0 }
 0x111   : > { %v2047_v8 = vpop.eup %2046 }
 0x112   : > { %v804_v15 = vmul.f32 %v2047_v8, %v2486_v0 }
 0x113   : > { %v2049_v20 = vpop.eup %2048 }
 0x114   : > { %v820_v26 = vmul.f32 %v804_v15, %v2421_v63  ;;  %v803_v27 = vmul.f32 %v2049_v20, %v2486_v0  ;;  %v858_v35 = vrot.slane %v804_v15, %v2493_v9  ;;  %v2515_v63 = vadd.f32 %v707_v22, %v706_v1 }
 0x115   : > { %v2051_v49 = vpop.eup %2050  ;;  %v700_v1 = vrot.slane %v699_v44, 2  ;;  %v2535_v22 = vmul.f32 0.125, %v577_v58 }
 0x116   : > { %v836_v39 = vsub.f32 %v2501_v21, %v820_v26  ;;  %v819_v40 = vmul.f32 %v803_v27, %v2427_v5  ;;  %v854_v41 = vrot.slane %v803_v27, %v2493_v9  ;;  %v916_v5 = vmul.f32 %v2395_v28, %v858_v35 }
 0x117   : > { %v806_v57 = vmul.f32 %v2051_v49, %v2486_v0  ;;  %v2053_v3 = vpop.eup %2052  ;;  %v711_v28 = vsel %vm479_vm1, %v635_v46, 0.0  ;;  %v531_v27 = vadd.f32 %v530_v2, %v529_v48  ;;  %v2540_v35 = vadd.f32 %v700_v1, %v699_v44 }
 0x118   : > { %v938_v50 = vrot.slane %v836_v39, %v2493_v9  ;;  %v835_v51 = vsub.f32 %v2501_v21, %v819_v40  ;;  %v915_v61 = vmul.f32 %v854_v41, %v2403_v33  ;;  %v709_v33 = vrot.slane %v2515_v63, 1 }
 0x119   : > { %v822_v8 = vmul.f32 %v806_v57, %v2433_v14  ;;  %v805_v26 = vmul.f32 %v2053_v3, %v2486_v0  ;;  %v866_v36 = vrot.slane %v806_v57, %v2493_v9  ;;  %v677_v39 = vrot.slane %v676_v12, 4  ;;  %v2561_v3 = vpop.f32.mrf.mxu1 }
 0x11a   : > { %v934_v62 = vrot.slane %v835_v51, %v2493_v9  ;;  %v996_v6 = vadd.f32 %v938_v50, %v916_v5  ;;  %v514_v46 = vadd.f32 %v513_v17, %v512_v53  ;;  %v622_v44 = vsub.f32 %v2464_v19, %v2535_v22 }
 0x11b   : > { %v838_v20 = vsub.f32 %v2501_v21, %v822_v8  ;;  %v821_v40 = vmul.f32 %v805_v26, %v2441_v25  ;;  %v862_v41 = vrot.slane %v805_v26, %v2493_v9  ;;  %v678_v48 = vadd.f32 %v677_v39, %v676_v12 }
 0x11c   : > { %v995_v15 = vadd.f32 %v934_v62, %v915_v61  ;;  %v1012_v31 = vmax.f32 %v996_v6, 0.0  ;;  %v569_v50 = vrot.slane %v568_v23, 1  ;;  %v2552_v51 = vadd.f32 %v719_v13, %v718_v45 }
 0x11d   : > { %v946_v49 = vrot.slane %v838_v20, %v2493_v9  ;;  %v837_v25 = vsub.f32 %v2501_v21, %v821_v40  ;;  %v532_v52 = vrot.slane %v531_v27, 2  ;;  %v587_v53 = vadd.f32 %v586_v30, %v585_v7 }
 0x11e   : > { %v1011_v14 = vmax.f32 %v995_v15, 0.0  ;;  %v702_v5 = vrot.slane %v2540_v35, 1  ;;  %v918_v57 = vmul.f32 %v2407_v37, %v866_v36  ;;  %v712_v58 = vrot.slane %v711_v28, 4 }
 0x11f   : > { %v679_v60 = vrot.slane %v678_v48, 2  ;;  %v917_v61 = vmul.f32 %v862_v41, %v2413_v43  ;;  %v942_v62 = vrot.slane %v837_v25, %v2493_v9  ;;  %v2559_v1 = vmul.f32 0.125, %v514_v46 }
 0x120   : > { %1936 = vmatprep.mubr.msk.f32.mxu1 %vm479_vm1, %v1011_v14  ;;  %v523_v2 = vrot.slane %v522_v38, 4  ;;  %v998_v45 = vadd.f32 %v946_v49, %v918_v57  ;;  %v638_v8 = vmul.f32 %v622_v44, %v622_v44  ;;  %v570_v13 = vadd.f32 %v569_v50, %v568_v23 }
 0x121   : > { %1937 = vmatmul.mubr.msk.f32.vlgmr.msra.gmra.mxu1 %vm479_vm1, %v1012_v31  ;;  %v680_v6 = vadd.f32 %v679_v60, %v678_v48  ;;  %v997_v7 = vadd.f32 %v942_v62, %v917_v61  ;;  %v613_v15 = vsub.f32 %v2470_v32, %v2559_v1  ;;  %v533_v37 = vadd.f32 %v532_v52, %v531_v27 }
 0x122   : > { %v588_v12 = vrot.slane %v587_v53, 2  ;;  %v713_v17 = vadd.f32 %v712_v58, %v711_v28  ;;  %v2565_v43 = vmul.f32 0.125, %v570_v13  ;;  %v578_v14 = vsel %vm479_vm1, %v2561_v3, 0.0 }
 0x123   : > { %v681_v20 = vrot.slane %v680_v6, 1  ;;  %v1013_v26 = vmax.f32 %v997_v7, 0.0  ;;  %v629_v30 = vmul.f32 %v613_v15, %v613_v15  ;;  %v534_v31 = vrot.slane %v533_v37, 1 }
 0x124   : > { %v589_v36 = vadd.f32 %v588_v12, %v587_v53  ;;  %v1014_v39 = vmax.f32 %v998_v45, 0.0  ;;  %v732_v23 = vsel %vm479_vm1, %v638_v8, 0.0  ;;  %v621_v41 = vsub.f32 %v2479_v55, %v2565_v43 }
 0x125   : > { %v682_v40 = vadd.f32 %v681_v20, %v680_v6  ;;  %v669_v27 = vsel %vm479_vm1, %v629_v30, 0.0  ;;  %v535_v28 = vadd.f32 %v534_v31, %v533_v37  ;;  %v524_v49 = vadd.f32 %v523_v2, %v522_v38  ;;  %1939 = vmatprep.mubr.msk.f32.mxu1 %vm479_vm1, %v1013_v26 }
 0x126   : > { %v590_v46 = vrot.slane %v589_v36, 1  ;;  %v714_v48 = vrot.slane %v713_v17, 2  ;;  %v670_v50 = vrot.slane %v669_v27, 4  ;;  %v637_v25 = vmul.f32 %v621_v41, %v621_v41  ;;  %1940 = vmatmul.mubr.msk.f32.gmra.mxu1 %vm479_vm1, %v1014_v39 }
 0x127   : > { %v758_v44 = vmul.f32 0.125, %v682_v40  ;;  %v2575_v52 = vmul.f32 0.125, %v535_v28  ;;  %v525_v57 = vrot.slane %v524_v49, 2  ;;  %v579_v58 = vrot.slane %v578_v14, 4 }
 0x128   : > { %v591_v53 = vadd.f32 %v590_v46, %v589_v36  ;;  %v733_v61 = vrot.slane %v732_v23, 4  ;;  %v671_v62 = vadd.f32 %v670_v50, %v669_v27  ;;  %v725_v45 = vsel %vm479_vm1, %v637_v25, 0.0 }
 0x129   : > { %v776_v60 = vadd.f32 1e-05, %v758_v44  ;;  %v726_v6 = vrot.slane %v725_v45, 4  ;;  %v616_v38 = vsub.f32 %v2509_v34, %v2575_v52  ;;  %v526_v8 = vadd.f32 %v525_v57, %v524_v49 }
 0x12a   : > { %v2580_v2 = vmul.f32 0.125, %v591_v53  ;;  %v721_v13 = vrot.slane %v2552_v51, 2  ;;  %v672_v7 = vrot.slane %v671_v62, 2  ;;  %v580_v15 = vadd.f32 %v579_v58, %v578_v14 }
 0x12b   : > { %2054 = vrsqrt.f32 %v776_v60  ;;  %v727_v37 = vadd.f32 %v726_v6, %v725_v45  ;;  %v632_v12 = vmul.f32 %v616_v38, %v616_v38  ;;  %v527_v26 = vrot.slane %v526_v8, 1 }
 0x12c   : > { %v624_v20 = vsub.f32 %v2522_v56, %v2580_v2  ;;  %v715_v30 = vadd.f32 %v714_v48, %v713_v17  ;;  %v734_v31 = vadd.f32 %v733_v61, %v732_v23  ;;  %v673_v36 = vadd.f32 %v672_v7, %v671_v62 }
 0x12d   : > { %v581_v39 = vrot.slane %v580_v15, 2  ;;  %v728_v40 = vrot.slane %v727_v37, 2  ;;  %v690_v41 = vsel %vm479_vm1, %v632_v12, 0.0  ;;  %v528_v28 = vadd.f32 %v527_v26, %v526_v8 }
 0x12e   : > { %v640_v27 = vmul.f32 %v624_v20, %v624_v20  ;;  %v703_v46 = vadd.f32 %v702_v5, %v2540_v35  ;;  %v674_v14 = vrot.slane %v673_v36, 1  ;;  %v691_v49 = vrot.slane %v690_v41, 4 }
 0x12f   : > { %v582_v44 = vadd.f32 %v581_v39, %v580_v15  ;;  %v710_v50 = vadd.f32 %v709_v33, %v2515_v63  ;;  %v722_v17 = vadd.f32 %v721_v13, %v2552_v51  ;;  %v2594_v48 = vmul.f32 0.125, %v528_v28 }
 0x130   : > { %v746_v23 = vsel %vm479_vm1, %v640_v27, 0.0  ;;  %v735_v25 = vrot.slane %v734_v31, 2  ;;  %v675_v53 = vadd.f32 %v674_v14, %v673_v36  ;;  %v692_v57 = vadd.f32 %v691_v49, %v690_v41 }
 0x131   : > { %v747_v58 = vrot.slane %v746_v23, 4  ;;  %v716_v60 = vrot.slane %v715_v30, 1  ;;  %v729_v61 = vadd.f32 %v728_v40, %v727_v37  ;;  %v615_v35 = vsub.f32 %v2537_v24, %v2594_v48 }
 0x132   : > { %v583_v5 = vrot.slane %v582_v44, 1  ;;  %v761_v62 = vmul.f32 0.125, %v703_v46  ;;  %v757_v45 = vmul.f32 0.125, %v675_v53  ;;  %v693_v6 = vrot.slane %v692_v57, 2 }
 0x133   : > { %v748_v63 = vadd.f32 %v747_v58, %v746_v23  ;;  %v762_v33 = vmul.f32 0.125, %v710_v50  ;;  %v723_v51 = vrot.slane %v722_v17, 1  ;;  %v631_v38 = vmul.f32 %v615_v35, %v615_v35 }
 0x134   : > { %v584_v8 = vadd.f32 %v583_v5, %v582_v44  ;;  %v736_v13 = vadd.f32 %v735_v25, %v734_v31  ;;  %v775_v7 = vadd.f32 1e-05, %v757_v45  ;;  %v694_v15 = vadd.f32 %v693_v6, %v692_v57 }
 0x135   : > { %v749_v12 = vrot.slane %v748_v63, 2  ;;  %v717_v20 = vadd.f32 %v716_v60, %v715_v30  ;;  %v730_v26 = vrot.slane %v729_v61, 1  ;;  %v683_v37 = vsel %vm479_vm1, %v631_v38, 0.0 }
 0x136   : > { %v2599_v36 = vmul.f32 0.125, %v584_v8  ;;  %v779_v39 = vadd.f32 1e-05, %v761_v62  ;;  %2056 = vrsqrt.f32 %v775_v7  ;;  %v695_v40 = vrot.slane %v694_v15, 1 }
 0x137   : > { %v684_v41 = vrot.slane %v683_v37, 4  ;;  %v780_v28 = vadd.f32 1e-05, %v762_v33  ;;  %v724_v46 = vadd.f32 %v723_v51, %v722_v17  ;;  %v737_v31 = vrot.slane %v736_v13, 1 }
 0x138   : > { %v2055_v27 = vpop.eup %2054  ;;  %v623_v14 = vsub.f32 %v2561_v3, %v2599_v36  ;;  %v696_v49 = vadd.f32 %v695_v40, %v694_v15  ;;  %v750_v44 = vadd.f32 %v749_v12, %v748_v63  ;;  %v763_v30 = vmul.f32 0.125, %v717_v20 }
 0x139   : > { %v685_v50 = vadd.f32 %v684_v41, %v683_v37  ;;  %v731_v23 = vadd.f32 %v730_v26, %v729_v61  ;;  %2058 = vrsqrt.f32 %v779_v39  ;;  %v808_v57 = vmul.f32 %v2055_v27, %v2486_v0 }
 0x13a   : > { %v639_v25 = vmul.f32 %v623_v14, %v623_v14  ;;  %v760_v53 = vmul.f32 0.125, %v696_v49  ;;  %2060 = vrsqrt.f32 %v780_v28  ;;  %v764_v35 = vmul.f32 0.125, %v724_v46 }
 0x13b   : > { %v686_v58 = vrot.slane %v685_v50, 2  ;;  %v738_v17 = vadd.f32 %v737_v31, %v736_v13  ;;  %v751_v62 = vrot.slane %v750_v44, 1  ;;  %v781_v45 = vadd.f32 1e-05, %v763_v30 }
 0x13c   : > { %v739_v60 = vsel %vm479_vm1, %v639_v25, 0.0  ;;  %v778_v5 = vadd.f32 1e-05, %v760_v53  ;;  %v765_v6 = vmul.f32 0.125, %v731_v23  ;;  %v824_v61 = vmul.f32 %v808_v57, %v2496_v18 }
 0x13d   : > { %v687_v33 = vadd.f32 %v686_v58, %v685_v50  ;;  %v740_v63 = vrot.slane %v739_v60, 4  ;;  %v782_v8 = vadd.f32 1e-05, %v764_v35  ;;  %v766_v7 = vmul.f32 0.125, %v738_v17 }
 0x13e   : > { %2062 = vrsqrt.f32 %v778_v5  ;;  %v752_v15 = vadd.f32 %v751_v62, %v750_v44  ;;  %v783_v12 = vadd.f32 1e-05, %v765_v6  ;;  %v840_v13 = vsub.f32 %v2501_v21, %v824_v61 }
 0x13f   : > { %v688_v51 = vrot.slane %v687_v33, 1  ;;  %v741_v38 = vadd.f32 %v740_v63, %v739_v60  ;;  %2064 = vrsqrt.f32 %v781_v45  ;;  %v784_v41 = vadd.f32 1e-05, %v766_v7 }
 0x140   : > { %2066 = vrsqrt.f32 %v782_v8  ;;  %v768_v28 = vmul.f32 0.125, %v752_v15  ;;  %v874_v18 = vrot.slane %v808_v57, %v2493_v9  ;;  %v954_v50 = vrot.slane %v840_v13, %v2493_v9 }
 0x141   : > { %v689_v20 = vadd.f32 %v688_v51, %v687_v33  ;;  %v742_v26 = vrot.slane %v741_v38, 2  ;;  %2068 = vrsqrt.f32 %v783_v12 }
 0x142   : > { %v786_v53 = vadd.f32 1e-05, %v768_v28  ;;  %v920_v58 = vmul.f32 %v2460_v11, %v874_v18 }
 0x143   : > { %v2057_v37 = vpop.eup %2056  ;;  %v759_v39 = vmul.f32 0.125, %v689_v20  ;;  %v743_v40 = vadd.f32 %v742_v26, %v741_v38 }
 0x144   : > { %v807_v27 = vmul.f32 %v2057_v37, %v2486_v0  ;;  %v1000_v5 = vadd.f32 %v954_v50, %v920_v58 }
 0x145   : > { %v777_v46 = vadd.f32 1e-05, %v759_v39  ;;  %v744_v14 = vrot.slane %v743_v40, 1 }
 0x146   : > { %v823_v31 = vmul.f32 %v807_v27, %v2559_v1  ;;  %v870_v49 = vrot.slane %v807_v27, %v2493_v9  ;;  %v2059_v44 = vpop.eup %2058  ;;  %v1016_v51 = vmax.f32 %v1000_v5, 0.0 }
 0x147   : > { %2070 = vrsqrt.f32 %v777_v46  ;;  %v745_v30 = vadd.f32 %v744_v14, %v743_v40  ;;  %v2061_v23 = vpop.eup %2060  ;;  %v811_v60 = vmul.f32 %v2059_v44, %v2486_v0 }
 0x148   : > { %2072 = vrsqrt.f32 %v784_v41  ;;  %v839_v25 = vsub.f32 %v2501_v21, %v823_v31  ;;  %v919_v35 = vmul.f32 %v870_v49, %v2470_v32  ;;  %v812_v63 = vmul.f32 %v2061_v23, %v2486_v0 }
 0x149   : > { %v767_v57 = vmul.f32 0.125, %v745_v30  ;;  %2074 = vrsqrt.f32 %v786_v53  ;;  %v827_v11 = vmul.f32 %v811_v60, %v2462_v16  ;;  %v886_v26 = vrot.slane %v811_v60, %v2493_v9 }
 0x14a   : > { %v950_v1 = vrot.slane %v839_v25, %v2493_v9  ;;  %v828_v15 = vmul.f32 %v812_v63, %v2456_v54  ;;  %v890_v54 = vrot.slane %v812_v63, %v2493_v9 }
 0x14b   : > { %v2063_v17 = vpop.eup %2062  ;;  %v785_v62 = vadd.f32 1e-05, %v767_v57  ;;  %v843_v12 = vsub.f32 %v2501_v21, %v827_v11  ;;  %v923_v14 = vmul.f32 %v886_v26, %v2411_v42 }
 0x14c   : > { %v999_v45 = vadd.f32 %v950_v1, %v919_v35  ;;  %v810_v6 = vmul.f32 %v2063_v17, %v2486_v0  ;;  %v2065_v33 = vpop.eup %2064  ;;  %v844_v41 = vsub.f32 %v2501_v21, %v828_v15 }
 0x14d   : > { %2076 = vrsqrt.f32 %v785_v62  ;;  %v2067_v32 = vpop.eup %2066  ;;  %v813_v8 = vmul.f32 %v2065_v33, %v2486_v0  ;;  %v966_v27 = vrot.slane %v843_v12, %v2493_v9 }
 0x14e   : > { %v1015_v61 = vmax.f32 %v999_v45, 0.0  ;;  %v826_v38 = vmul.f32 %v810_v6, %v2575_v52  ;;  %v2069_v7 = vpop.eup %2068  ;;  %v814_v16 = vmul.f32 %v2067_v32, %v2486_v0  ;;  %v882_v28 = vrot.slane %v810_v6, %v2493_v9 }
 0x14f   : > { %v829_v13 = vmul.f32 %v813_v8, %v2491_v4  ;;  %v815_v39 = vmul.f32 %v2069_v7, %v2486_v0  ;;  %v970_v53 = vrot.slane %v844_v41, %v2493_v9  ;;  %v1003_v58 = vadd.f32 %v966_v27, %v923_v14 }
 0x150   : > { %1942 = vmatprep.mubr.msk.f32.mxu1 %vm479_vm1, %v1015_v61  ;;  %v842_v37 = vsub.f32 %v2501_v21, %v826_v38  ;;  %v830_v4 = vmul.f32 %v814_v16, %v2477_v47  ;;  %v922_v42 = vmul.f32 %v2509_v34, %v882_v28  ;;  %v894_v47 = vrot.slane %v813_v8, %v2493_v9 }
 0x151   : > { %1943 = vmatmul.mubr.msk.f32.gmra.mxu1 %vm479_vm1, %v1016_v51  ;;  %v845_v50 = vsub.f32 %v2501_v21, %v829_v13  ;;  %v831_v30 = vmul.f32 %v815_v39, %v2565_v43  ;;  %v902_v63 = vrot.slane %v815_v39, %v2493_v9  ;;  %v1019_v38 = vmax.f32 %v1003_v58, 0.0 }
 0x152   : > { %v962_v49 = vrot.slane %v842_v37, %v2493_v9  ;;  %v846_v43 = vsub.f32 %v2501_v21, %v830_v4  ;;  %v925_v33 = vmul.f32 %v894_v47, %v2429_v10  ;;  %v1249_v10 = vld [vmem:[%s2992_s3] sm:$0xff] }
 0x153   : > { %v974_v5 = vrot.slane %v845_v50, %v2493_v9  ;;  %v847_v62 = vsub.f32 %v2501_v21, %v831_v30  ;;  %1966 = vmatprep.subr.mxu0 %v1249_v10 }
 0x154   : > { %v2071_v20 = vpop.eup %2070  ;;  %v1002_v17 = vadd.f32 %v962_v49, %v922_v42  ;;  %1967 = vmatpush3.msra.mxu0 %v1249_v10 }
 0x155   : > { %v2073_v52 = vpop.eup %2072  ;;  %v809_v40 = vmul.f32 %v2071_v20, %v2486_v0  ;;  %v1005_v32 = vadd.f32 %v974_v5, %v925_v33  ;;  %v982_v8 = vrot.slane %v847_v62, %v2493_v9 }
 0x156   : > { %v816_v31 = vmul.f32 %v2073_v52, %v2486_v0  ;;  %v2075_v44 = vpop.eup %2074 }
 0x157   : > { %v825_v18 = vmul.f32 %v809_v40, %v2594_v48  ;;  %v878_v46 = vrot.slane %v809_v40, %v2493_v9  ;;  %v924_v48 = vmul.f32 %v2397_v29, %v890_v54  ;;  %v818_v29 = vmul.f32 %v2075_v44, %v2486_v0 }
 0x158   : > { %v832_v1 = vmul.f32 %v816_v31, %v2535_v22  ;;  %v978_v22 = vrot.slane %v846_v43, %v2493_v9  ;;  %v906_v15 = vrot.slane %v816_v31, %v2493_v9  ;;  %v1021_v52 = vmax.f32 %v1005_v32, 0.0 }
 0x159   : > { %v841_v23 = vsub.f32 %v2501_v21, %v825_v18  ;;  %v921_v57 = vmul.f32 %v878_v46, %v2537_v24  ;;  %v898_v24 = vrot.slane %v814_v16, %v2493_v9  ;;  %v1004_v6 = vadd.f32 %v970_v53, %v924_v48 }
 0x15a   : > { %v2077_v25 = vpop.eup %2076  ;;  %v848_v61 = vsub.f32 %v2501_v21, %v832_v1  ;;  %v834_v51 = vmul.f32 %v818_v29, %v2580_v2  ;;  %v927_v2 = vmul.f32 %v902_v63, %v2479_v55  ;;  %v928_v39 = vmul.f32 %v2464_v19, %v906_v15 }
 0x15b   : > { %v958_v60 = vrot.slane %v841_v23, %v2493_v9  ;;  %v817_v35 = vmul.f32 %v2077_v25, %v2486_v0  ;;  %v1018_v0 = vmax.f32 %v1002_v17, 0.0  ;;  %v926_v7 = vmul.f32 %v2419_v59, %v898_v24 }
 0x15c   : > { %v1020_v20 = vmax.f32 %v1004_v6, 0.0  ;;  %v986_v16 = vrot.slane %v848_v61, %v2493_v9  ;;  %v850_v37 = vsub.f32 %v2501_v21, %v834_v51  ;;  %v1007_v59 = vadd.f32 %v982_v8, %v927_v2 }
 0x15d   : > { %v1001_v34 = vadd.f32 %v958_v60, %v921_v57  ;;  %v833_v45 = vmul.f32 %v817_v35, %v2599_v36  ;;  %v910_v12 = vrot.slane %v817_v35, %v2493_v9  ;;  %v1006_v26 = vadd.f32 %v978_v22, %v926_v7 }
 0x15e   : > { %v914_v40 = vrot.slane %v818_v29, %v2493_v9  ;;  %v1008_v54 = vadd.f32 %v986_v16, %v928_v39  ;;  %v994_v27 = vrot.slane %v850_v37, %v2493_v9  ;;  %v1023_v28 = vmax.f32 %v1007_v59, 0.0  ;;  %v1797_v59 = vld [vmem:[%s2993_s4 + $0x3] ss:$0 sm:$0xff] }
 0x15f   : > { %v1017_v11 = vmax.f32 %v1001_v34, 0.0  ;;  %v849_v36 = vsub.f32 %v2501_v21, %v833_v45  ;;  %v929_v55 = vmul.f32 %v910_v12, %v2561_v3  ;;  %v1022_v41 = vmax.f32 %v1006_v26, 0.0 }
 0x160   : > { %v930_v18 = vmul.f32 %v2522_v56, %v914_v40  ;;  %v1024_v19 = vmax.f32 %v1008_v54, 0.0 }
 0x161   : > { %1945 = vmatprep.mubr.msk.f32.mxu1 %vm479_vm1, %v1017_v11  ;;  %v990_v13 = vrot.slane %v849_v36, %v2493_v9  ;;  %v1780_v9 = vld [vmem:[%s2993_s4 + $0x2] ss:$0 sm:$0xff] }
 0x162   : > { %1946 = vmatmul.mubr.msk.f32.gmra.mxu1 %vm479_vm1, %v1018_v0  ;;  %v1010_v46 = vadd.f32 %v994_v27, %v930_v18 }
 0x163   : > { %1948 = vmatprep.mubr.msk.f32.mxu1 %vm479_vm1, %v1019_v38  ;;  %v1009_v21 = vadd.f32 %v990_v13, %v929_v55 }
 0x164   : > { %v1026_v3 = vmax.f32 %v1010_v46, 0.0 }
 0x165   : > { %v1025_v14 = vmax.f32 %v1009_v21, 0.0 }
 0x166   : > { %1949 = vmatmul.mubr.msk.f32.gmra.mxu1 %vm479_vm1, %v1020_v20 }
 0x167   : > { %1951 = vmatprep.mubr.msk.f32.mxu1 %vm479_vm1, %v1021_v52 }
 0x16a   : > { %1952 = vmatmul.mubr.msk.f32.gmra.mxu1 %vm479_vm1, %v1022_v41 }
 0x16b   : > { %1954 = vmatprep.mubr.msk.f32.mxu1 %vm479_vm1, %v1023_v28 }
 0x16e   : > { %1955 = vmatmul.mubr.msk.f32.gmra.mxu1 %vm479_vm1, %v1024_v19 }
 0x16f   : > { %1957 = vmatprep.mubr.msk.f32.mxu1 %vm479_vm1, %v1025_v14 }
 0x172   : > { %1958 = vmatmul.mubr.msk.f32.gmra.mxu1 %vm479_vm1, %v1026_v3 }
 0x1e1   : > { %v1938_v4 = vpop.f32.mrf.mxu1 }
 0x1e2   : > { %v1160_v56 = vadd.f32 %v1938_v4, %v1780_v9 }
 0x1e3   : > { %v1154_v31 = vpop.f32.mrf.mxu1 }
 0x1e4   : > { %v1155_v49 = vadd.f32 %v1780_v9, %v1154_v31  ;;  %v1234_v50 = vmax.f32 %v1160_v56, 0.0 }
 0x1e6   : > { %v1233_v44 = vmax.f32 %v1155_v49, 0.0  ;;  %v1941_v30 = vpop.f32.mrf.mxu1 }
 0x1e7   : > { %v1170_v23 = vadd.f32 %v1941_v30, %v1780_v9 }
 0x1e8   : > { %1968 = vmatprep.mubr.msk.f32.mxu0 %vm285_vm0, %v1233_v44  ;;  %v1164_v25 = vpop.f32.mrf.mxu1 }
 0x1e9   : > { %1969 = vmatmul.mubr.msk.f32.vlgmr.msra.gmra.mxu0 %vm285_vm0, %v1234_v50  ;;  %v1165_v48 = vadd.f32 %v1780_v9, %v1164_v25  ;;  %v1236_v58 = vmax.f32 %v1170_v23, 0.0 }
 0x1eb   : > { %v1235_v53 = vmax.f32 %v1165_v48, 0.0 }
 0x1ed   : > { %1971 = vmatprep.mubr.msk.f32.mxu0 %vm285_vm0, %v1235_v53 }
 0x1ee   : > { %1972 = vmatmul.mubr.msk.f32.gmra.mxu0 %vm285_vm0, %v1236_v58 }
 0x211   : > { %v1944_v42 = vpop.f32.mrf.mxu1 }
 0x212   : > { %v1180_v47 = vadd.f32 %v1944_v42, %v1780_v9 }
 0x213   : > { %v1174_v57 = vpop.f32.mrf.mxu1 }
 0x214   : > { %v1175_v60 = vadd.f32 %v1780_v9, %v1174_v57  ;;  %v1238_v43 = vmax.f32 %v1180_v47, 0.0 }
 0x216   : > { %v1237_v35 = vmax.f32 %v1175_v60, 0.0 }
 0x218   : > { %1974 = vmatprep.mubr.msk.f32.mxu0 %vm285_vm0, %v1237_v35 }
 0x219   : > { %1975 = vmatmul.mubr.msk.f32.gmra.mxu0 %vm285_vm0, %v1238_v43 }
 0x222   : > { %v1947_v1 = vpop.f32.mrf.mxu1 }
 0x223   : > { %v1190_v17 = vadd.f32 %v1947_v1, %v1780_v9 }
 0x224   : > { %v1184_v29 = vpop.f32.mrf.mxu1 }
 0x225   : > { %v1185_v5 = vadd.f32 %v1780_v9, %v1184_v29  ;;  %v1240_v45 = vmax.f32 %v1190_v17, 0.0 }
 0x226   : > { %v1950_v62 = vpop.f32.mrf.mxu1 }
 0x227   : > { %v1239_v34 = vmax.f32 %v1185_v5, 0.0  ;;  %v1200_v24 = vadd.f32 %v1950_v62, %v1780_v9 }
 0x228   : > { %v1194_v6 = vpop.f32.mrf.mxu1 }
 0x229   : > { %v1195_v33 = vadd.f32 %v1780_v9, %v1194_v6  ;;  %1977 = vmatprep.mubr.msk.f32.mxu0 %vm285_vm0, %v1239_v34  ;;  %v1242_v22 = vmax.f32 %v1200_v24, 0.0 }
 0x22a   : > { %v1953_v63 = vpop.f32.mrf.mxu1  ;;  %1978 = vmatmul.mubr.msk.f32.gmra.mxu0 %vm285_vm0, %v1240_v45 }
 0x22b   : > { %v1241_v11 = vmax.f32 %v1195_v33, 0.0  ;;  %v1210_v61 = vadd.f32 %v1953_v63, %v1780_v9 }
 0x22c   : > { %v1204_v0 = vpop.f32.mrf.mxu1 }
 0x22d   : > { %v1205_v51 = vadd.f32 %v1780_v9, %v1204_v0  ;;  %1980 = vmatprep.mubr.msk.f32.mxu0 %vm285_vm0, %v1241_v11  ;;  %v1244_v8 = vmax.f32 %v1210_v61, 0.0 }
 0x22e   : > { %v1956_v38 = vpop.f32.mrf.mxu1  ;;  %1981 = vmatmul.mubr.msk.f32.gmra.mxu0 %vm285_vm0, %v1242_v22 }
 0x22f   : > { %v1243_v32 = vmax.f32 %v1205_v51, 0.0  ;;  %v1220_v36 = vadd.f32 %v1956_v38, %v1780_v9 }
 0x230   : > { %v1214_v10 = vpop.f32.mrf.mxu1 }
 0x231   : > { %v1215_v7 = vadd.f32 %v1780_v9, %v1214_v10  ;;  %1983 = vmatprep.mubr.msk.f32.mxu0 %vm285_vm0, %v1243_v32  ;;  %v1246_v12 = vmax.f32 %v1220_v36, 0.0 }
 0x232   : > { %v1959_v15 = vpop.f32.mrf.mxu1  ;;  %1984 = vmatmul.mubr.msk.f32.gmra.mxu0 %vm285_vm0, %v1244_v8 }
 0x233   : > { %v1245_v2 = vmax.f32 %v1215_v7, 0.0  ;;  %v1230_v20 = vadd.f32 %v1959_v15, %v1780_v9 }
 0x234   : > { %v1224_v26 = vpop.f32.mrf.mxu1 }
 0x235   : > { %v1225_v16 = vadd.f32 %v1780_v9, %v1224_v26  ;;  %1986 = vmatprep.mubr.msk.f32.mxu0 %vm285_vm0, %v1245_v2  ;;  %v1248_v52 = vmax.f32 %v1230_v20, 0.0 }
 0x236   : > { %1987 = vmatmul.mubr.msk.f32.gmra.mxu0 %vm285_vm0, %v1246_v12 }
 0x237   : > { %v1247_v37 = vmax.f32 %v1225_v16, 0.0 }
 0x239   : > { %1989 = vmatprep.mubr.msk.f32.mxu0 %vm285_vm0, %v1247_v37 }
 0x23a   : > { %1990 = vmatmul.mubr.msk.f32.gmra.mxu0 %vm285_vm0, %v1248_v52 }
 0x2a9   : > { %v1970_v13 = vpop.f32.mrf.mxu0 }
 0x2aa   : > { %v2717_v39 = vadd.f32 %v1970_v13, %v1797_v59 }
 0x2ab   : > { %v1372_v40 = vpop.f32.mrf.mxu0 }
 0x2ac   : > { %1452 = vst [vmem:[%s2721_s11 + $0x8] sm:$0xff] %v2717_v39  ;;  %v2725_v55 = vadd.f32 %v1797_v59, %v1372_v40  ;;  %1469 = vmax.xlane.f32.xlu0 %v2717_v39 }
 0x2ae   : > { %1451 = vst [vmem:[%s2721_s11] sm:$0xff] %v2725_v55  ;;  %v1973_v41 = vpop.f32.mrf.mxu0 }
 0x2af   : > { %v2731_v54 = vadd.f32 %v1973_v41, %v1797_v59 }
 0x2b0   : > { %1467 = vmax.xlane.f32.xlu0 %v2725_v55  ;;  %v1382_v27 = vpop.f32.mrf.mxu0 }
 0x2b1   : > { %1454 = vst [vmem:[%s2721_s11 + $0x18] sm:$0xff] %v2731_v54  ;;  %v2735_v28 = vadd.f32 %v1797_v59, %v1382_v27  ;;  %1473 = vmax.xlane.f32.xlu1 %v2731_v54 }
 0x2b3   : > { %1453 = vst [vmem:[%s2721_s11 + $0x10] sm:$0xff] %v2735_v28 }
 0x2b5   : > { %1471 = vmax.xlane.f32.xlu1 %v2735_v28 }
 0x2d9   : > { %v1976_v21 = vpop.f32.mrf.mxu0 }
 0x2da   : > { %v2741_v18 = vadd.f32 %v1976_v21, %v1797_v59 }
 0x2db   : > { %v1392_v19 = vpop.f32.mrf.mxu0 }
 0x2dc   : > { %1456 = vst [vmem:[%s2721_s11 + $0x28] sm:$0xff] %v2741_v18  ;;  %v2745_v46 = vadd.f32 %v1797_v59, %v1392_v19  ;;  %1477 = vmax.xlane.f32.xlu1 %v2741_v18 }
 0x2de   : > { %1455 = vst [vmem:[%s2721_s11 + $0x20] sm:$0xff] %v2745_v46  ;;  %1475 = vmax.xlane.f32.xlu0 %v2745_v46 }
 0x2ea   : > { %v1979_v14 = vpop.f32.mrf.mxu0 }
 0x2eb   : > { %v2751_v3 = vadd.f32 %v1979_v14, %v1797_v59 }
 0x2ec   : > { %v1402_v9 = vpop.f32.mrf.mxu0 }
 0x2ed   : > { %1458 = vst [vmem:[%s2721_s11 + $0x38] sm:$0xff] %v2751_v3  ;;  %v2755_v4 = vadd.f32 %v1797_v59, %v1402_v9  ;;  %1481 = vmax.xlane.f32.xlu1 %v2751_v3 }
 0x2ee   : > { %v1982_v56 = vpop.f32.mrf.mxu0 }
 0x2ef   : > { %1457 = vst [vmem:[%s2721_s11 + $0x30] sm:$0xff] %v2755_v4  ;;  %v2760_v31 = vadd.f32 %v1982_v56, %v1797_v59  ;;  %1479 = vmax.xlane.f32.xlu0 %v2755_v4 }
 0x2f0   : > { %v1412_v49 = vpop.f32.mrf.mxu0 }
 0x2f1   : > { %1460 = vst [vmem:[%s2721_s11 + $0x48] sm:$0xff] %v2760_v31  ;;  %v2765_v44 = vadd.f32 %v1797_v59, %v1412_v49  ;;  %1485 = vmax.xlane.f32.xlu1 %v2760_v31 }
 0x2f2   : > { %v1985_v50 = vpop.f32.mrf.mxu0 }
 0x2f3   : > { %1459 = vst [vmem:[%s2721_s11 + $0x40] sm:$0xff] %v2765_v44  ;;  %v2770_v30 = vadd.f32 %v1985_v50, %v1797_v59  ;;  %1483 = vmax.xlane.f32.xlu0 %v2765_v44 }
 0x2f4   : > { %v1422_v23 = vpop.f32.mrf.mxu0 }
 0x2f5   : > { %1462 = vst [vmem:[%s2721_s11 + $0x58] sm:$0xff] %v2770_v30  ;;  %v2775_v25 = vadd.f32 %v1797_v59, %v1422_v23  ;;  %1489 = vmax.xlane.f32.xlu1 %v2770_v30 }
 0x2f6   : > { %v1988_v48 = vpop.f32.mrf.mxu0 }
 0x2f7   : > { %1461 = vst [vmem:[%s2721_s11 + $0x50] sm:$0xff] %v2775_v25  ;;  %v2780_v53 = vadd.f32 %v1988_v48, %v1797_v59  ;;  %1487 = vmax.xlane.f32.xlu0 %v2775_v25 }
 0x2f8   : > { %v1432_v58 = vpop.f32.mrf.mxu0 }
 0x2f9   : > { %1464 = vst [vmem:[%s2721_s11 + $0x68] sm:$0xff] %v2780_v53  ;;  %v2785_v42 = vadd.f32 %v1797_v59, %v1432_v58  ;;  %1493 = vmax.xlane.f32.xlu1 %v2780_v53 }
 0x2fa   : > { %v1991_v47 = vpop.f32.mrf.mxu0 }
 0x2fb   : > { %1463 = vst [vmem:[%s2721_s11 + $0x60] sm:$0xff] %v2785_v42  ;;  %v2790_v57 = vadd.f32 %v1991_v47, %v1797_v59  ;;  %1491 = vmax.xlane.f32.xlu0 %v2785_v42 }
 0x2fc   : > { %v1442_v60 = vpop.f32.mrf.mxu0 }
 0x2fd   : > { %1466 = vst [vmem:[%s2721_s11 + $0x78] sm:$0xff] %v2790_v57  ;;  %v2795_v35 = vadd.f32 %v1797_v59, %v1442_v60  ;;  %1497 = vmax.xlane.f32.xlu1 %v2790_v57 }
 0x2ff   : > { %1465 = vst [vmem:[%s2721_s11 + $0x70] sm:$0xff] %v2795_v35  ;;  %1495 = vmax.xlane.f32.xlu0 %v2795_v35 }
 0x335   : > { %v1470_v43 = vpop.xlane.xlu0 %1469 }
 0x336   : > { %v1500_v1 = vsub.f32 %v2717_v39, %v1470_v43 }
 0x338   : > { %v1517_v17 = vmul.f32 1.442695, %v1500_v1 }
 0x339   : > { %v1468_v29 = vpop.xlane.xlu0 %1467 }
 0x33a   : > { %2078 = vpow2.f32 %v1517_v17  ;;  %v1499_v5 = vsub.f32 %v2725_v55, %v1468_v29  ;;  %v1474_v34 = vpop.xlane.xlu1 %1473 }
 0x33b   : > { %v1502_v45 = vsub.f32 %v2731_v54, %v1474_v34 }
 0x33c   : > { %v1515_v62 = vmul.f32 1.442695, %v1499_v5 }
 0x33d   : > { %v1521_v24 = vmul.f32 1.442695, %v1502_v45 }
 0x33e   : > { %2080 = vpow2.f32 %v1515_v62  ;;  %v1472_v6 = vpop.xlane.xlu1 %1471 }
 0x33f   : > { %2082 = vpow2.f32 %v1521_v24  ;;  %v1501_v33 = vsub.f32 %v2735_v28, %v1472_v6 }
 0x341   : > { %v1519_v63 = vmul.f32 1.442695, %v1501_v33 }
 0x343   : > { %2084 = vpow2.f32 %v1519_v63 }
 0x347   : > { %v2805_v11 = vpop.eup %2078 }
 0x348   : > { %1549 = vadd.xlane.f32.xlu1 %v2805_v11 }
 0x34b   : > { %v2808_v22 = vpop.eup %2080 }
 0x34c   : > { %1547 = vadd.xlane.f32.xlu0 %v2808_v22  ;;  %v2811_v61 = vpop.eup %2082 }
 0x34d   : > { %1553 = vadd.xlane.f32.xlu1 %v2811_v61 }
 0x350   : > { %v2814_v0 = vpop.eup %2084 }
 0x351   : > { %1551 = vadd.xlane.f32.xlu0 %v2814_v0 }
 0x365   : > { %v1478_v51 = vpop.xlane.xlu1 %1477 }
 0x366   : > { %v1504_v38 = vsub.f32 %v2741_v18, %v1478_v51 }
 0x367   : > { %v1476_v32 = vpop.xlane.xlu0 %1475 }
 0x368   : > { %v1503_v8 = vsub.f32 %v2745_v46, %v1476_v32  ;;  %v1525_v36 = vmul.f32 1.442695, %v1504_v38 }
 0x36a   : > { %v1523_v10 = vmul.f32 1.442695, %v1503_v8  ;;  %2086 = vpow2.f32 %v1525_v36 }
 0x36c   : > { %2088 = vpow2.f32 %v1523_v10 }
 0x376   : > { %v1482_v7 = vpop.xlane.xlu1 %1481 }
 0x377   : > { %v2819_v15 = vpop.eup %2086  ;;  %v1506_v2 = vsub.f32 %v2751_v3, %v1482_v7 }
 0x378   : > { %v1480_v12 = vpop.xlane.xlu0 %1479  ;;  %1557 = vadd.xlane.f32.xlu1 %v2819_v15 }
 0x379   : > { %v2823_v20 = vpop.eup %2088  ;;  %v1505_v26 = vsub.f32 %v2755_v4, %v1480_v12  ;;  %v1529_v16 = vmul.f32 1.442695, %v1506_v2 }
 0x37a   : > { %v1486_v37 = vpop.xlane.xlu1 %1485  ;;  %1555 = vadd.xlane.f32.xlu0 %v2823_v20 }
 0x37b   : > { %v1527_v52 = vmul.f32 1.442695, %v1505_v26  ;;  %2090 = vpow2.f32 %v1529_v16  ;;  %v1508_v59 = vsub.f32 %v2760_v31, %v1486_v37 }
 0x37c   : > { %v1484_v13 = vpop.xlane.xlu0 %1483 }
 0x37d   : > { %2092 = vpow2.f32 %v1527_v52  ;;  %v1507_v39 = vsub.f32 %v2765_v44, %v1484_v13  ;;  %v1533_v40 = vmul.f32 1.442695, %v1508_v59 }
 0x37e   : > { %v1490_v55 = vpop.xlane.xlu1 %1489 }
 0x37f   : > { %v1531_v41 = vmul.f32 1.442695, %v1507_v39  ;;  %2094 = vpow2.f32 %v1533_v40  ;;  %v1510_v54 = vsub.f32 %v2770_v30, %v1490_v55 }
 0x380   : > { %v1488_v27 = vpop.xlane.xlu0 %1487 }
 0x381   : > { %2096 = vpow2.f32 %v1531_v41  ;;  %v1509_v28 = vsub.f32 %v2775_v25, %v1488_v27  ;;  %v1537_v21 = vmul.f32 1.442695, %v1510_v54 }
 0x382   : > { %v1494_v18 = vpop.xlane.xlu1 %1493 }
 0x383   : > { %v1535_v19 = vmul.f32 1.442695, %v1509_v28  ;;  %2098 = vpow2.f32 %v1537_v21  ;;  %v1512_v46 = vsub.f32 %v2780_v53, %v1494_v18 }
 0x384   : > { %v1492_v14 = vpop.xlane.xlu0 %1491 }
 0x385   : > { %2100 = vpow2.f32 %v1535_v19  ;;  %v1511_v3 = vsub.f32 %v2785_v42, %v1492_v14  ;;  %v1541_v9 = vmul.f32 1.442695, %v1512_v46 }
 0x386   : > { %v1498_v4 = vpop.xlane.xlu1 %1497 }
 0x387   : > { %v1539_v56 = vmul.f32 1.442695, %v1511_v3  ;;  %2102 = vpow2.f32 %v1541_v9  ;;  %v1514_v31 = vsub.f32 %v2790_v57, %v1498_v4 }
 0x388   : > { %v2834_v49 = vpop.eup %2090  ;;  %v1496_v44 = vpop.xlane.xlu0 %1495 }
 0x389   : > { %2104 = vpow2.f32 %v1539_v56  ;;  %v1513_v50 = vsub.f32 %v2795_v35, %v1496_v44  ;;  %v1545_v30 = vmul.f32 1.442695, %v1514_v31  ;;  %1561 = vadd.xlane.f32.xlu1 %v2834_v49 }
 0x38a   : > { %v2838_v23 = vpop.eup %2092 }
 0x38b   : > { %v1543_v25 = vmul.f32 1.442695, %v1513_v50  ;;  %2106 = vpow2.f32 %v1545_v30  ;;  %1559 = vadd.xlane.f32.xlu0 %v2838_v23 }
 0x38c   : > { %v2841_v48 = vpop.eup %2094 }
 0x38d   : > { %2108 = vpow2.f32 %v1543_v25  ;;  %1565 = vadd.xlane.f32.xlu1 %v2841_v48 }
 0x38e   : > { %v2844_v53 = vpop.eup %2096 }
 0x38f   : > { %1563 = vadd.xlane.f32.xlu0 %v2844_v53 }
 0x390   : > { %v2847_v58 = vpop.eup %2098 }
 0x391   : > { %1569 = vadd.xlane.f32.xlu1 %v2847_v58 }
 0x392   : > { %v2850_v42 = vpop.eup %2100 }
 0x393   : > { %1567 = vadd.xlane.f32.xlu0 %v2850_v42 }
 0x394   : > { %v2853_v47 = vpop.eup %2102 }
 0x395   : > { %1573 = vadd.xlane.f32.xlu1 %v2853_v47 }
 0x396   : > { %v2856_v57 = vpop.eup %2104 }
 0x397   : > { %1571 = vadd.xlane.f32.xlu0 %v2856_v57 }
 0x398   : > { %v2859_v60 = vpop.eup %2106 }
 0x399   : > { %1577 = vadd.xlane.f32.xlu1 %v2859_v60 }
 0x39a   : > { %v2862_v35 = vpop.eup %2108 }
 0x39b   : > { %1575 = vadd.xlane.f32.xlu0 %v2862_v35 }
 0x39c   : > { %2155 = shalt.err (!%p2152_p3)
}
 0x39d   : > { %s2156_s9 = scalar_lea.hbm %s2872_s16, 2048  ;;  %s2160_s14 = scalar_lea.hbm %s2994_s5, 8192 }
 0x39e   : > { %p2157_p4 = scmp.ne.s32.totalorder %s2872_s16, %s2156_s9  ;;  %p2161_p9 = scmp.lt.s32.totalorder %s2872_s16, %s2994_s5 }
 0x39f   : > { %p2162_p10 = scmp.lt.s32.totalorder %s2160_s14, %s2156_s9 }
 0x3a0   : > { %p2158_p7 = pnand %p2157_p4, %p2311_p5 }
 0x3a1   : > { %p2163_p11 = por %p2162_p10, %p2161_p9 }
 0x3a2   : > { %p2159_p8 = pneg %p2158_p7 }
 0x3a4   : > { %p2164_p12 = pnand %p2163_p11, %p2159_p8 }
 0x3a6   : > { %2167 = shalt.err (!%p2164_p12)
}
 0x3a7   : > { %s2235_s18 = smov 128   ;;  %s2236_s20 = smov 8  }
 0x3a8   : > { %2000 = dma.vmem_to_hbm [thread:$0]  (%p2311_p5), %s2874_s13, 2048, %s2872_s16, %s1628_s17, %s2235_s18, %s2235_s18, %s2236_s20  }
 0x3a9   : > { %s2905_s26 = scalar_lea.vmem [#allocation4], %s1760_s29  ;;  %s2943_s17 = scalar_lea.hbm %s2995_s6, %s1822_s12 }
 0x3aa   : > { %s1662_s29 = sshll.u32 %s2905_s26, 4  ;;  %s1633_s9 = scalar_lea.sflag [#allocation5], %s2711_s28  ;;  %s2945_s29 = int_to_ptr.vmem [resolvable:$true] %s1662_s29 }
 0x3ab   : > { %s2168_s10 = scalar_lea.vmem %s2945_s29, 2048  ;;  %s2237_s11 = smov [#allocation4]  }
 0x3ac   : > { %p2169_p13 = scmp.ne.s32.totalorder %s2945_s29, %s2168_s10  ;;  %s2172_s14 = sshll.u32 %s2237_s11, 4  ;;  %s2173_s14 = int_to_ptr.vmem [resolvable:$false] %s2172_s14 }
 0x3ad   : > { %s2174_s25 = scalar_lea.vmem %s2173_s14, 4096  ;;  %p2175_p2 = scmp.lt.s32.totalorder %s2945_s29, %s2173_s14 }
 0x3ae   : > { %p2170_p0 = pnand %p2169_p13, %p2311_p5  ;;  %p2176_p3 = scmp.lt.s32.totalorder %s2174_s25, %s2168_s10 }
 0x3b0   : > { %p2171_p1 = pneg %p2170_p0  ;;  %p2177_p4 = por %p2176_p3, %p2175_p2 }
 0x3b2   : > { %p2178_p7 = pnand %p2177_p4, %p2171_p1 }
 0x3d1   : > { %v1550_v43 = vpop.xlane.xlu1 %1549 }
 0x3d2   : > { %2110 = vrcp.f32 %v1550_v43 }
 0x3d5   : > { %v1548_v1 = vpop.xlane.xlu0 %1547 }
 0x3d6   : > { %2112 = vrcp.f32 %v1548_v1  ;;  %v1554_v17 = vpop.xlane.xlu1 %1553 }
 0x3d7   : > { %2114 = vrcp.f32 %v1554_v17 }
 0x3da   : > { %v1552_v5 = vpop.xlane.xlu0 %1551 }
 0x3db   : > { %2116 = vrcp.f32 %v1552_v5 }
 0x3df   : > { %v2111_v29 = vpop.eup %2110 }
 0x3e0   : > { %v1596_v62 = vmul.f32 %v2111_v29, %v2805_v11 }
 0x3e2   : > { %1612 = vst [vmem:[%s2905_s26 + $0x8] sm:$0xff] %v1596_v62 }
 0x3e3   : > { %v2113_v34 = vpop.eup %2112 }
 0x3e4   : > { %v1595_v45 = vmul.f32 %v2113_v34, %v2808_v22  ;;  %v2115_v24 = vpop.eup %2114 }
 0x3e5   : > { %v1598_v6 = vmul.f32 %v2115_v24, %v2811_v61 }
 0x3e6   : > { %1611 = vst [vmem:[%s2905_s26] sm:$0xff] %v1595_v45 }
 0x3e7   : > { %1614 = vst [vmem:[%s2905_s26 + $0x18] sm:$0xff] %v1598_v6 }
 0x3e8   : > { %v2117_v33 = vpop.eup %2116 }
 0x3e9   : > { %v1597_v63 = vmul.f32 %v2117_v33, %v2814_v0 }
 0x3eb   : > { %1613 = vst [vmem:[%s2905_s26 + $0x10] sm:$0xff] %v1597_v63 }
 0x401   : > { %v1558_v11 = vpop.xlane.xlu1 %1557 }
 0x402   : > { %2118 = vrcp.f32 %v1558_v11 }
 0x403   : > { %v1556_v51 = vpop.xlane.xlu0 %1555 }
 0x404   : > { %2120 = vrcp.f32 %v1556_v51 }
 0x40f   : > { %v2119_v38 = vpop.eup %2118 }
 0x410   : > { %v1600_v32 = vmul.f32 %v2119_v38, %v2819_v15 }
 0x411   : > { %v2121_v8 = vpop.eup %2120 }
 0x412   : > { %1616 = vst [vmem:[%s2905_s26 + $0x28] sm:$0xff] %v1600_v32  ;;  %v1599_v22 = vmul.f32 %v2121_v8, %v2823_v20  ;;  %v1562_v36 = vpop.xlane.xlu1 %1561 }
 0x413   : > { %2122 = vrcp.f32 %v1562_v36 }
 0x414   : > { %1615 = vst [vmem:[%s2905_s26 + $0x20] sm:$0xff] %v1599_v22  ;;  %v1560_v61 = vpop.xlane.xlu0 %1559 }
 0x415   : > { %2124 = vrcp.f32 %v1560_v61 }
 0x416   : > { %v1566_v10 = vpop.xlane.xlu1 %1565 }
 0x417   : > { %2126 = vrcp.f32 %v1566_v10 }
 0x418   : > { %v1564_v0 = vpop.xlane.xlu0 %1563 }
 0x419   : > { %2128 = vrcp.f32 %v1564_v0 }
 0x41a   : > { %v1570_v7 = vpop.xlane.xlu1 %1569 }
 0x41b   : > { %2130 = vrcp.f32 %v1570_v7 }
 0x41c   : > { %v1568_v2 = vpop.xlane.xlu0 %1567 }
 0x41d   : > { %2132 = vrcp.f32 %v1568_v2 }
 0x41e   : > { %v1574_v15 = vpop.xlane.xlu1 %1573 }
 0x41f   : > { %2134 = vrcp.f32 %v1574_v15 }
 0x420   : > { %v2123_v12 = vpop.eup %2122  ;;  %v1572_v20 = vpop.xlane.xlu0 %1571 }
 0x421   : > { %v1602_v26 = vmul.f32 %v2123_v12, %v2834_v49  ;;  %2136 = vrcp.f32 %v1572_v20 }
 0x422   : > { %v2125_v16 = vpop.eup %2124  ;;  %v1578_v37 = vpop.xlane.xlu1 %1577 }
 0x423   : > { %1618 = vst [vmem:[%s2905_s26 + $0x38] sm:$0xff] %v1602_v26  ;;  %v1601_v52 = vmul.f32 %v2125_v16, %v2838_v23  ;;  %2138 = vrcp.f32 %v1578_v37 }
 0x424   : > { %v2127_v59 = vpop.eup %2126  ;;  %v1576_v13 = vpop.xlane.xlu0 %1575 }
 0x425   : > { %1617 = vst [vmem:[%s2905_s26 + $0x30] sm:$0xff] %v1601_v52  ;;  %v1604_v39 = vmul.f32 %v2127_v59, %v2841_v48  ;;  %2140 = vrcp.f32 %v1576_v13 }
 0x426   : > { %v2129_v40 = vpop.eup %2128 }
 0x427   : > { %1620 = vst [vmem:[%s2905_s26 + $0x48] sm:$0xff] %v1604_v39  ;;  %v1603_v55 = vmul.f32 %v2129_v40, %v2844_v53 }
 0x428   : > { %v2131_v41 = vpop.eup %2130 }
 0x429   : > { %1619 = vst [vmem:[%s2905_s26 + $0x40] sm:$0xff] %v1603_v55  ;;  %v1606_v54 = vmul.f32 %v2131_v41, %v2847_v58 }
 0x42a   : > { %v2133_v27 = vpop.eup %2132 }
 0x42b   : > { %1622 = vst [vmem:[%s2905_s26 + $0x58] sm:$0xff] %v1606_v54  ;;  %v1605_v28 = vmul.f32 %v2133_v27, %v2850_v42 }
 0x42c   : > { %v2135_v21 = vpop.eup %2134 }
 0x42d   : > { %1621 = vst [vmem:[%s2905_s26 + $0x50] sm:$0xff] %v1605_v28  ;;  %v1608_v18 = vmul.f32 %v2135_v21, %v2853_v47 }
 0x42e   : > { %v2137_v19 = vpop.eup %2136 }
 0x42f   : > { %1624 = vst [vmem:[%s2905_s26 + $0x68] sm:$0xff] %v1608_v18  ;;  %v1607_v46 = vmul.f32 %v2137_v19, %v2856_v57 }
 0x430   : > { %v2139_v14 = vpop.eup %2138 }
 0x431   : > { %1623 = vst [vmem:[%s2905_s26 + $0x60] sm:$0xff] %v1607_v46  ;;  %v1610_v3 = vmul.f32 %v2139_v14, %v2859_v60 }
 0x432   : > { %v2141_v9 = vpop.eup %2140 }
 0x433   : > { %1626 = vst [vmem:[%s2905_s26 + $0x78] sm:$0xff] %v1610_v3  ;;  %v1609_v4 = vmul.f32 %v2141_v9, %v2862_v35 }
 0x435   : > { %1625 = vst [vmem:[%s2905_s26 + $0x70] sm:$0xff] %v1609_v4 }
 0x436   : > { %2181 = shalt.err (!%p2178_p7)
}
 0x437   : > { %s2182_s12 = scalar_lea.hbm %s2943_s17, 2048  ;;  %s2186_s19 = scalar_lea.hbm %s2995_s6, 8192 }
 0x438   : > { %p2183_p8 = scmp.ne.s32.totalorder %s2943_s17, %s2182_s12  ;;  %p2187_p11 = scmp.lt.s32.totalorder %s2943_s17, %s2995_s6 }
 0x439   : > { %p2188_p12 = scmp.lt.s32.totalorder %s2186_s19, %s2182_s12 }
 0x43a   : > { %p2184_p9 = pnand %p2183_p8, %p2311_p5 }
 0x43b   : > { %p2189_p13 = por %p2188_p12, %p2187_p11 }
 0x43c   : > { %p2185_p10 = pneg %p2184_p9 }
 0x43e   : > { %p2190_p0 = pnand %p2189_p13, %p2185_p10 }
 0x440   : > { %2193 = shalt.err (!%p2190_p0)
}
 0x441   : > { %2001 = dma.vmem_to_hbm [thread:$0]  (%p2311_p5), %s2945_s29, 2048, %s2943_s17, %s1633_s9, %s2235_s18, %s2235_s18, %s2236_s20  }
 0x442 PF: > { %p2011_p1 = scmp.ge.s32.totalorder %s2232_s24, 2  ;;  %s1677_s16 = sand.u32 1, %s2220_s21  }
 0x443   : > { %s1678_s10 = scalar_lea.sflag [#allocation3], %s1677_s16 }
 0x444   : > { %p2005_p2 = pnand %p2011_p1, %p2315_p6 }
 0x446   : > { %p2006_p3 = pneg %p2005_p2 }
 0x448   : > { %2211 = dma.done.wait (%p2006_p3), %s1678_s10, 2048  }
 0x449   : > { %2213 = vsyncadd (%p2006_p3), %s1678_s10, 4294965248  ;;  %s1687_s11 = scalar_lea.sflag [#allocation5], %s1677_s16 }
 0x44a   : > { %2215 = dma.done.wait (%p2006_p3), %s1687_s11, 2048  }
 0x44b   : > { %2217 = vsyncadd (%p2006_p3), %s1687_s11, 4294965248  ;;  %p20_p5 = scmp.ge.s32.totalorder %s2298_s27, 6   ;;  %s2998_s21 = smov %s2224_s22 }
 0x44c   : > { %s2999_s22 = smov %s2228_s23  ;;  %s3000_s23 = smov %s2309_s30 }
 0x44d   : > { %s3001_s24 = smov %s2298_s27  ;;  %22 = sbr.rel (!%p20_p5) target bundleno = 5 (0x5), region = 92 }
 0x452   :  { %1692 = vsyncpa [#allocation3], 1 }
 0x453   :  { %1694 = vsyncpa [#allocation3 + $0x1], 1 }
 0x454   :  { %1695 = vsyncpa [#allocation5], 1 }
 0x455   :  { %1697 = vsyncpa [#allocation5 + $0x1], 1 }

</bundles_post_ra>
